<compile_context>
chip_gen: v6e
topology: v6e:2x2x1
jax: 0.10.0
libtpu: 0.0.40
codegen_flags: <defaults>
</compile_context>

<pallas_src>
import jax
import jax.numpy as jnp
from jax import lax
from jax.experimental import pallas as pl
from jax.experimental.pallas import tpu as pltpu

# DLA-34 channel progression (dla34.channels); channels[-1] == 512.
DLA_CHANNELS = (16, 32, 64, 128, 256, 512)
FEAT_C = DLA_CHANNELS[-1]      # 512
POOL_K = 16                    # AvgPool2d(kernel_size=16) -> last level must be 16x16


# ------------------------------------------------------------------ Pallas head
def _head_kernel(feat_ref, wf_ref, bf_ref, out_ref):
    # feat_ref : (TB, C, HW)  last-level features, channels-major (free reshape of NCHW)
    # wf_ref   : (1, C)       fused weight  (Wc @ Wb) / HW      (whole array in VMEM)
    # bf_ref   : (1, 1)       fused bias    Wc @ bb + bc        (whole array in VMEM)
    # out_ref  : (TB, 1)
    #
    # AvgPool + 1x1 conv + Linear collapse (linearity) to: lane-reduce over HW,
    # VPU multiply by the fused weight, lane-reduce over C, add fused bias.
    pooled = jnp.sum(feat_ref[...].astype(jnp.float32), axis=-1)      # (TB, C) XLU reduce
    weighted = pooled * wf_ref[...]                                   # (TB, C) VPU mul
    cls = jnp.sum(weighted, axis=-1, keepdims=True) + bf_ref[...]     # (TB, 1)
    out_ref[...] = cls.astype(out_ref.dtype)


def _pick_tb(B, cap=16):
    # Never degenerate to tb=1; keep tb == B (full-dim block) for tiny batches,
    # otherwise a multiple of 8 so the (tb, 1) output block satisfies the layout rule.
    if B <= 8:
        return B
    if B <= cap:
        return 8          # >= 2 grid steps (megacore), 4 MiB/step
    return cap            # 8 MiB/step; boundary block (if any) is masked by Pallas


def dla_encoder_head(feat_nchw, wb, bb, wc, bc, *, tb=None):
    """bottleneck_conv + AvgPool2d(16) + reshape + cls_head, fused into one Pallas kernel."""
    B, C, H, W = feat_nchw.shape
    assert H == POOL_K and W == POOL_K, (
        "fused head assumes AvgPool2d(16) covers the whole last-level map "
        f"(got {H}x{W}); use a 512x512 input so the stride-32 level is 16x16")
    hw = H * W
    # Free, contiguous reshape (no transpose -> no extra HBM round trip).
    feat = feat_nchw.reshape(B, C, hw)

    # Exact algebraic fusion (f32 precision to match the PyTorch fp32 reference).
    wb2 = wb.reshape(C, C)                                             # Conv2d (Cout, Cin)
    w_fused = jnp.dot(wc, wb2, precision=lax.Precision.HIGHEST) / float(hw)   # (1, C)
    b_fused = (jnp.dot(wc, bb.reshape(C, 1), precision=lax.Precision.HIGHEST)
               + bc.reshape(1, 1))                                             # (1, 1)

    if tb is None:
        tb = _pick_tb(B)
    num_blocks = pl.cdiv(B, tb)

    return pl.pallas_call(
        _head_kernel,
        out_shape=jax.ShapeDtypeStruct((B, 1), jnp.float32),
        grid_spec=pltpu.PrefetchScalarGridSpec(
            num_scalar_prefetch=0,
            grid=(num_blocks,),
            in_specs=[
                # (tb, 512, 256): last two dims satisfy the (8,128) tiling rule
                # (and the (16,128) bf16 tile, should the backbone emit bf16).
                pl.BlockSpec((tb, C, hw), lambda b: (b, 0, 0)),
                # Tiny fused weights/bias: whole-array VMEM operands (no double buffering).
                pl.BlockSpec(memory_space=pltpu.MemorySpace.VMEM),
                pl.BlockSpec(memory_space=pltpu.MemorySpace.VMEM),
            ],
            out_specs=pl.BlockSpec((tb, 1), lambda b: (b, 0)),
        ),
        compiler_params=pltpu.CompilerParams(
            dimension_semantics=("parallel",),
            # 2 x 8 MiB double-buffered input at tb=16 + weights/output; headroom on
            # every generation (v5e default scoped VMEM is only 16 MiB).
            vmem_limit_bytes=40 * 1024 * 1024,
        ),
    )(feat, w_fused, b_fused)


# -------------------------------------------------------- simplified DLA-34 base
def _conv2d_nchw(x, w, stride, padding):
    return lax.conv_general_dilated(
        x, w,
        window_strides=(stride, stride),
        padding=[(padding, padding), (padding, padding)],
        dimension_numbers=("NCHW", "OIHW", "NCHW"),
    )


def simplified_dla34_backbone(x, convs):
    # TODO(synk): the full dla34 tree aggregation (Tree/BasicBlock/BatchNorm,
    # pretrained ImageNet weights) has no clean in-script equivalent; this is a
    # channel- and stride-faithful conv stem producing the same level shapes
    # (return_levels=True -> 6 levels, last one 512ch at stride 32).
    h = jax.nn.relu(_conv2d_nchw(x, convs[0], 1, 3))   # base_layer 7x7, 3 -> 16
    h = jax.nn.relu(_conv2d_nchw(h, convs[1], 1, 1))   # level0, 16 -> 16
    levels = [h]
    for i in range(5):                                 # level1..level5, stride 2 each
        h = jax.nn.relu(_conv2d_nchw(h, convs[2 + i], 2, 1))
        levels.append(h)
    return levels                                      # levels[-1]: (B, 512, H/32, W/32)


# -------------------------------------------------------------------- parameters
def init_params(key):
    def conv_w(k, cout, cin, kh, kw):
        fan_in = cin * kh * kw
        return jax.random.normal(k, (cout, cin, kh, kw), jnp.float32) / jnp.sqrt(fan_in)

    keys = jax.random.split(key, 12)
    convs = [
        conv_w(keys[0], 16, 3, 7, 7),      # base_layer
        conv_w(keys[1], 16, 16, 3, 3),     # level0
        conv_w(keys[2], 32, 16, 3, 3),     # level1
        conv_w(keys[3], 64, 32, 3, 3),     # level2
        conv_w(keys[4], 128, 64, 3, 3),    # level3
        conv_w(keys[5], 256, 128, 3, 3),   # level4
        conv_w(keys[6], 512, 256, 3, 3),   # level5
    ]
    head = {
        "wb": jax.random.normal(keys[7], (FEAT_C, FEAT_C), jnp.float32) / jnp.sqrt(FEAT_C),
        "bb": jax.random.normal(keys[8], (FEAT_C,), jnp.float32) * 0.01,
        "wc": jax.random.normal(keys[9], (1, FEAT_C), jnp.float32) / jnp.sqrt(FEAT_C),
        "bc": jax.random.normal(keys[10], (1,), jnp.float32) * 0.01,
    }
    return {"convs": convs, "head": head}


def dla_encoder_forward(x, params):
    levels = simplified_dla34_backbone(x, params["convs"])       # encode = base_0(input)
    h = params["head"]
    return dla_encoder_head(levels[-1], h["wb"], h["bb"], h["wc"], h["bc"])


def _head_reference(feat_nchw, wb, bb, wc, bc):
    # Unfused pure-JAX reference of: 1x1 conv -> AvgPool2d(16) -> reshape -> Linear.
    B, C, H, W = feat_nchw.shape
    pooled = jnp.mean(feat_nchw.reshape(B, C, H * W), axis=-1)                 # (B, C)
    bott = jnp.dot(pooled, wb.reshape(C, C).T,
                   precision=lax.Precision.HIGHEST) + bb.reshape(1, C)          # (B, C)
    return jnp.dot(bott, wc.T, precision=lax.Precision.HIGHEST) + bc.reshape(1, 1)


# -------------------------------------------------------------------------- main
if __name__ == "__main__":
    key = jax.random.PRNGKey(0)
    k_in, k_p = jax.random.split(key)
    # AvgPool2d(kernel_size=16) on the stride-32 last DLA level implies a
    # 512x512 input (smallest spatial size the forward pass supports).
    x = jax.random.normal(k_in, (2, 3, 512, 512), dtype=jnp.float32)
    params = init_params(k_p)

    cls = jax.jit(dla_encoder_forward)(x, params)
    cls = jax.block_until_ready(cls)
    assert cls.shape == (2, 1) and cls.dtype == jnp.float32

    # Correctness: fused Pallas head vs unfused pure-JAX head on the same features.
    feat_last = jax.jit(lambda xx, pp: simplified_dla34_backbone(xx, pp["convs"])[-1])(x, params)
    h = params["head"]
    ref = _head_reference(feat_last, h["wb"], h["bb"], h["wc"], h["bc"])
    ref = jax.block_until_ready(ref)
    assert jnp.allclose(cls, ref, rtol=2e-3, atol=2e-3), (cls, ref)

    print("KERNEL_OK")
</pallas_src>

<mosaic_0001>
module attributes {stable_mosaic.version = 11 : i64} {
  func.func @_head_kernel(%arg0: i32, %arg1: memref<2x512x256xf32, #tpu.memory_space<vmem>>, %arg2: memref<1x512xf32, #tpu.memory_space<vmem>>, %arg3: memref<1x1xf32, #tpu.memory_space<vmem>>, %arg4: memref<2x1xf32, #tpu.memory_space<vmem>>) attributes {dimension_semantics = [#tpu.dimension_semantics<parallel>], iteration_bounds = array<i64: 1>, scalar_prefetch = 0 : i64, scratch_operands = 0 : i64, tpu.core_type = #tpu.core_type<tc>, window_params = [{transform_indices = @transform_0, window_bounds = array<i64: 2, 512, 256>}, {pipeline_mode = #tpu.pipeline_mode<synchronous>, transform_indices = @transform_1, window_bounds = array<i64: 1, 512>}, {pipeline_mode = #tpu.pipeline_mode<synchronous>, transform_indices = @transform_2, window_bounds = array<i64: 1, 1>}, {transform_indices = @transform_3, window_bounds = array<i64: 2, 1>}]} {
    %c0 = arith.constant 0 : index
    %c0_0 = arith.constant 0 : index
    %c0_1 = arith.constant 0 : index
    %0 = vector.load %arg1[%c0, %c0_0, %c0_1] : memref<2x512x256xf32, #tpu.memory_space<vmem>>, vector<2x512x256xf32>
    %cst = arith.constant dense<0.000000e+00> : vector<2x512xf32>
    %1 = vector.multi_reduction <add>, %0, %cst [2] : vector<2x512x256xf32> to vector<2x512xf32>
    %c0_2 = arith.constant 0 : index
    %c0_3 = arith.constant 0 : index
    %2 = vector.load %arg2[%c0_2, %c0_3] : memref<1x512xf32, #tpu.memory_space<vmem>>, vector<1x512xf32>
    %3 = vector.broadcast %2 : vector<1x512xf32> to vector<2x512xf32>
    %4 = arith.mulf %1, %3 : vector<2x512xf32>
    %cst_4 = arith.constant dense<0.000000e+00> : vector<2xf32>
    %5 = vector.multi_reduction <add>, %4, %cst_4 [1] : vector<2x512xf32> to vector<2xf32>
    %6 = vector.shape_cast %5 : vector<2xf32> to vector<2x1xf32>
    %c0_5 = arith.constant 0 : index
    %c0_6 = arith.constant 0 : index
    %7 = vector.load %arg3[%c0_5, %c0_6] : memref<1x1xf32, #tpu.memory_space<vmem>>, vector<1x1xf32>
    %8 = vector.broadcast %7 : vector<1x1xf32> to vector<2x1xf32>
    %9 = arith.addf %6, %8 : vector<2x1xf32>
    %c0_7 = arith.constant 0 : index
    %c0_8 = arith.constant 0 : index
    %10 = vector.load %arg4[%c0_7, %c0_8] : memref<2x1xf32, #tpu.memory_space<vmem>>, vector<2x1xf32>
    tpu.vector_store %arg4[%c0_7, %c0_8], %9 {strides = array<i32>} : memref<2x1xf32, #tpu.memory_space<vmem>>, vector<2x1xf32>,
    return
  }
  func.func @transform_0(%arg0: i32) -> (i32, i32, i32) {
    %c0_i32 = arith.constant 0 : i32
    %c0_i32_0 = arith.constant 0 : i32
    %c0_i32_1 = arith.constant 0 : i32
    return %arg0, %c0_i32, %c0_i32_0 : i32, i32, i32
  }
  func.func @transform_1(%arg0: i32) -> (i32, i32) {
    %c0_i32 = arith.constant 0 : i32
    %c0_i32_0 = arith.constant 0 : i32
    %c0_i32_1 = arith.constant 0 : i32
    return %c0_i32, %c0_i32_0 : i32, i32
  }
  func.func @transform_2(%arg0: i32) -> (i32, i32) {
    %c0_i32 = arith.constant 0 : i32
    %c0_i32_0 = arith.constant 0 : i32
    %c0_i32_1 = arith.constant 0 : i32
    return %c0_i32, %c0_i32_0 : i32, i32
  }
  func.func @transform_3(%arg0: i32) -> (i32, i32) {
    %c0_i32 = arith.constant 0 : i32
    %c0_i32_0 = arith.constant 0 : i32
    return %arg0, %c0_i32 : i32, i32
  }
}

</mosaic_0001>

<bundles_post_ra>
// kernel: dla_encoder_forward.1
= control target key start
LH: loop header
LB: loop body
LE: loop exit
PB: predicated region body
PF: predicated region fallthrough
CT: control target
= control target key end

     0   :  { %vm1641_vm0 = vcmask 130112   ;;  %vm1648_vm1 = vcmask 195712   ;;  %vm1655_vm2 = vcmask 261312   ;;  %vm1662_vm3 = vcmask 326912   ;;  %s4285_s0 = inlined_call_operand.vmem [shape: f32[2,512,256], index: 0, kind: input, shape index: {}]   ;;  %s4286_s1 = inlined_call_operand.vmem [shape: f32[1,512], index: 1, kind: input, shape index: {}]   ;;  %s4287_s2 = inlined_call_operand.<no memory space> [shape: f32[1,1], index: 2, kind: input, shape index: {}]   ;;  %s4288_s3 = inlined_call_operand.vmem [shape: f32[2,1], index: 3, kind: output, shape index: {}]  }
   0x1   :  { %v20_v0 = vld [vmem:[%s4285_s0 + $0x20] sm:$0xff]  ;;  %v21_v1 = vld [vmem:[%s4285_s0 + $0x28] sm:$0xff]  ;;  %v22_v5 = vld [vmem:[%s4285_s0 + $0x30] sm:$0xff]  ;;  %vm1669_vm4 = vcmask 392512   ;;  %vm1676_vm5 = vcmask 458112   ;;  %vm1683_vm6 = vcmask 523712  }
   0x2   :  { %v16_v2 = vld [vmem:[%s4285_s0] sm:$0xff]  ;;  %v278_v3 = vadd.f32 %v21_v1, %v20_v0  ;;  %v17_v4 = vld [vmem:[%s4285_s0 + $0x8] sm:$0xff]  ;;  %v23_v6 = vld [vmem:[%s4285_s0 + $0x38] sm:$0xff]  ;;  %vm1690_vm7 = vcmask 589312   ;;  %vm1697_vm8 = vcmask 654912   ;;  %vm1704_vm9 = vcmask 720512  }
   0x3   :  { %v272_v7 = vadd.f32 %v17_v4, %v16_v2  ;;  %v18_v8 = vld [vmem:[%s4285_s0 + $0x10] sm:$0xff]  ;;  %v19_v9 = vld [vmem:[%s4285_s0 + $0x18] sm:$0xff]  ;;  %v281_v10 = vadd.f32 %v23_v6, %v22_v5  ;;  %v24_v14 = vld [vmem:[%s4285_s0 + $0x40] sm:$0xff]  ;;  %vm4305_vm10 = vcmask 786112   ;;  %vm1718_vm11 = vcmask 851712  }
   0x4   :  { %279 = vadd.xlane.f32.xlu1 %v278_v3  ;;  %v275_v11 = vadd.f32 %v19_v9, %v18_v8  ;;  %v26_v12 = vld [vmem:[%s4285_s0 + $0x50] sm:$0xff]  ;;  %v27_v13 = vld [vmem:[%s4285_s0 + $0x58] sm:$0xff]  ;;  %v25_v15 = vld [vmem:[%s4285_s0 + $0x48] sm:$0xff]  ;;  %vm1725_vm12 = vcmask 917312   ;;  %vm1732_vm13 = vcmask 982912   ;;  %vm1739_vm14 = vcmask 1048512  }
   0x5   :  { %273 = vadd.xlane.f32.xlu0 %v272_v7  ;;  %v287_v16 = vadd.f32 %v27_v13, %v26_v12  ;;  %v284_v17 = vadd.f32 %v25_v15, %v24_v14  ;;  %v30_v18 = vld [vmem:[%s4285_s0 + $0x70] sm:$0xff]  ;;  %v31_v19 = vld [vmem:[%s4285_s0 + $0x78] sm:$0xff]  ;;  %v28_v20 = vld [vmem:[%s4285_s0 + $0x60] sm:$0xff]  ;;  %vm2294_vm15 = vcmask 1041409  }
   0x6   :  { %v29_v21 = vld [vmem:[%s4285_s0 + $0x68] sm:$0xff]  ;;  %v293_v22 = vadd.f32 %v31_v19, %v30_v18  ;;  %v34_v24 = vld [vmem:[%s4285_s0 + $0x90] sm:$0xff]  ;;  %v35_v25 = vld [vmem:[%s4285_s0 + $0x98] sm:$0xff] }
   0x7   :  { %v290_v23 = vadd.f32 %v29_v21, %v28_v20  ;;  %v32_v26 = vld [vmem:[%s4285_s0 + $0x80] sm:$0xff]  ;;  %v33_v27 = vld [vmem:[%s4285_s0 + $0x88] sm:$0xff]  ;;  %v299_v28 = vadd.f32 %v35_v25, %v34_v24  ;;  %v38_v30 = vld [vmem:[%s4285_s0 + $0xb0] sm:$0xff] }
   0x8   :  { %282 = vadd.xlane.f32.xlu1 %v281_v10  ;;  %v296_v29 = vadd.f32 %v33_v27, %v32_v26  ;;  %v39_v31 = vld [vmem:[%s4285_s0 + $0xb8] sm:$0xff]  ;;  %v36_v32 = vld [vmem:[%s4285_s0 + $0xa0] sm:$0xff]  ;;  %v37_v33 = vld [vmem:[%s4285_s0 + $0xa8] sm:$0xff] }
   0x9   :  { %276 = vadd.xlane.f32.xlu0 %v275_v11  ;;  %v305_v34 = vadd.f32 %v39_v31, %v38_v30  ;;  %v302_v35 = vadd.f32 %v37_v33, %v36_v32  ;;  %v42_v36 = vld [vmem:[%s4285_s0 + $0xd0] sm:$0xff]  ;;  %v43_v37 = vld [vmem:[%s4285_s0 + $0xd8] sm:$0xff]  ;;  %v40_v38 = vld [vmem:[%s4285_s0 + $0xc0] sm:$0xff] }
   0xa   :  { %v41_v39 = vld [vmem:[%s4285_s0 + $0xc8] sm:$0xff]  ;;  %v311_v40 = vadd.f32 %v43_v37, %v42_v36  ;;  %v46_v42 = vld [vmem:[%s4285_s0 + $0xf0] sm:$0xff]  ;;  %v47_v43 = vld [vmem:[%s4285_s0 + $0xf8] sm:$0xff] }
   0xb   :  { %v308_v41 = vadd.f32 %v41_v39, %v40_v38  ;;  %v44_v44 = vld [vmem:[%s4285_s0 + $0xe0] sm:$0xff]  ;;  %v45_v45 = vld [vmem:[%s4285_s0 + $0xe8] sm:$0xff]  ;;  %v317_v46 = vadd.f32 %v47_v43, %v46_v42  ;;  %v50_v48 = vld [vmem:[%s4285_s0 + $0x110] sm:$0xff] }
   0xc   :  { %288 = vadd.xlane.f32.xlu1 %v287_v16  ;;  %v314_v47 = vadd.f32 %v45_v45, %v44_v44  ;;  %v51_v49 = vld [vmem:[%s4285_s0 + $0x118] sm:$0xff]  ;;  %v48_v50 = vld [vmem:[%s4285_s0 + $0x100] sm:$0xff]  ;;  %v49_v51 = vld [vmem:[%s4285_s0 + $0x108] sm:$0xff] }
   0xd   :  { %285 = vadd.xlane.f32.xlu0 %v284_v17  ;;  %v323_v52 = vadd.f32 %v51_v49, %v50_v48  ;;  %v320_v53 = vadd.f32 %v49_v51, %v48_v50  ;;  %v54_v54 = vld [vmem:[%s4285_s0 + $0x130] sm:$0xff]  ;;  %v55_v55 = vld [vmem:[%s4285_s0 + $0x138] sm:$0xff]  ;;  %v52_v56 = vld [vmem:[%s4285_s0 + $0x120] sm:$0xff] }
   0xe   :  { %v53_v57 = vld [vmem:[%s4285_s0 + $0x128] sm:$0xff]  ;;  %v329_v58 = vadd.f32 %v55_v55, %v54_v54  ;;  %v58_v60 = vld [vmem:[%s4285_s0 + $0x150] sm:$0xff]  ;;  %v59_v61 = vld [vmem:[%s4285_s0 + $0x158] sm:$0xff] }
   0xf   :  { %v326_v59 = vadd.f32 %v53_v57, %v52_v56  ;;  %v56_v62 = vld [vmem:[%s4285_s0 + $0x140] sm:$0xff]  ;;  %v57_v63 = vld [vmem:[%s4285_s0 + $0x148] sm:$0xff]  ;;  %v335_v0 = vadd.f32 %v59_v61, %v58_v60  ;;  %v62_v2 = vld [vmem:[%s4285_s0 + $0x170] sm:$0xff] }
  0x10   :  { %294 = vadd.xlane.f32.xlu1 %v293_v22  ;;  %v332_v1 = vadd.f32 %v57_v63, %v56_v62  ;;  %v63_v3 = vld [vmem:[%s4285_s0 + $0x178] sm:$0xff]  ;;  %v60_v4 = vld [vmem:[%s4285_s0 + $0x160] sm:$0xff]  ;;  %v61_v5 = vld [vmem:[%s4285_s0 + $0x168] sm:$0xff] }
  0x11   :  { %291 = vadd.xlane.f32.xlu0 %v290_v23  ;;  %v341_v6 = vadd.f32 %v63_v3, %v62_v2  ;;  %v338_v7 = vadd.f32 %v61_v5, %v60_v4  ;;  %v66_v8 = vld [vmem:[%s4285_s0 + $0x190] sm:$0xff]  ;;  %v67_v9 = vld [vmem:[%s4285_s0 + $0x198] sm:$0xff]  ;;  %v64_v10 = vld [vmem:[%s4285_s0 + $0x180] sm:$0xff] }
  0x12   :  { %v65_v11 = vld [vmem:[%s4285_s0 + $0x188] sm:$0xff]  ;;  %v347_v12 = vadd.f32 %v67_v9, %v66_v8  ;;  %v70_v14 = vld [vmem:[%s4285_s0 + $0x1b0] sm:$0xff]  ;;  %v71_v15 = vld [vmem:[%s4285_s0 + $0x1b8] sm:$0xff] }
  0x13   :  { %v344_v13 = vadd.f32 %v65_v11, %v64_v10  ;;  %v68_v16 = vld [vmem:[%s4285_s0 + $0x1a0] sm:$0xff]  ;;  %v69_v17 = vld [vmem:[%s4285_s0 + $0x1a8] sm:$0xff]  ;;  %v353_v18 = vadd.f32 %v71_v15, %v70_v14  ;;  %v74_v20 = vld [vmem:[%s4285_s0 + $0x1d0] sm:$0xff] }
  0x14   :  { %300 = vadd.xlane.f32.xlu1 %v299_v28  ;;  %v350_v19 = vadd.f32 %v69_v17, %v68_v16  ;;  %v75_v21 = vld [vmem:[%s4285_s0 + $0x1d8] sm:$0xff]  ;;  %v72_v22 = vld [vmem:[%s4285_s0 + $0x1c0] sm:$0xff]  ;;  %v73_v23 = vld [vmem:[%s4285_s0 + $0x1c8] sm:$0xff] }
  0x15   :  { %297 = vadd.xlane.f32.xlu0 %v296_v29  ;;  %v359_v24 = vadd.f32 %v75_v21, %v74_v20  ;;  %v356_v25 = vadd.f32 %v73_v23, %v72_v22  ;;  %v78_v26 = vld [vmem:[%s4285_s0 + $0x1f0] sm:$0xff]  ;;  %v79_v27 = vld [vmem:[%s4285_s0 + $0x1f8] sm:$0xff]  ;;  %v76_v28 = vld [vmem:[%s4285_s0 + $0x1e0] sm:$0xff] }
  0x16   :  { %v77_v29 = vld [vmem:[%s4285_s0 + $0x1e8] sm:$0xff]  ;;  %v365_v30 = vadd.f32 %v79_v27, %v78_v26  ;;  %v82_v32 = vld [vmem:[%s4285_s0 + $0x210] sm:$0xff]  ;;  %v83_v33 = vld [vmem:[%s4285_s0 + $0x218] sm:$0xff] }
  0x17   :  { %v362_v31 = vadd.f32 %v77_v29, %v76_v28  ;;  %v371_v36 = vadd.f32 %v83_v33, %v82_v32  ;;  %v86_v38 = vld [vmem:[%s4285_s0 + $0x230] sm:$0xff]  ;;  %v87_v39 = vld [vmem:[%s4285_s0 + $0x238] sm:$0xff] }
  0x18   :  { %306 = vadd.xlane.f32.xlu1 %v305_v34  ;;  %v80_v34 = vld [vmem:[%s4285_s0 + $0x200] sm:$0xff]  ;;  %v377_v42 = vadd.f32 %v87_v39, %v86_v38  ;;  %v90_v44 = vld [vmem:[%s4285_s0 + $0x250] sm:$0xff]  ;;  %v91_v45 = vld [vmem:[%s4285_s0 + $0x258] sm:$0xff] }
  0x19   :  { %303 = vadd.xlane.f32.xlu0 %v302_v35  ;;  %v81_v35 = vld [vmem:[%s4285_s0 + $0x208] sm:$0xff]  ;;  %v383_v48 = vadd.f32 %v91_v45, %v90_v44  ;;  %v94_v50 = vld [vmem:[%s4285_s0 + $0x270] sm:$0xff]  ;;  %v95_v51 = vld [vmem:[%s4285_s0 + $0x278] sm:$0xff] }
  0x1a   :  { %v368_v37 = vadd.f32 %v81_v35, %v80_v34  ;;  %v389_v54 = vadd.f32 %v95_v51, %v94_v50  ;;  %v98_v56 = vld [vmem:[%s4285_s0 + $0x290] sm:$0xff]  ;;  %v99_v57 = vld [vmem:[%s4285_s0 + $0x298] sm:$0xff] }
  0x1b   :  { %v395_v60 = vadd.f32 %v99_v57, %v98_v56  ;;  %v102_v62 = vld [vmem:[%s4285_s0 + $0x2b0] sm:$0xff]  ;;  %v103_v63 = vld [vmem:[%s4285_s0 + $0x2b8] sm:$0xff] }
  0x1c   :  { %312 = vadd.xlane.f32.xlu1 %v311_v40  ;;  %v84_v40 = vld [vmem:[%s4285_s0 + $0x220] sm:$0xff]  ;;  %v401_v2 = vadd.f32 %v103_v63, %v102_v62  ;;  %v106_v4 = vld [vmem:[%s4285_s0 + $0x2d0] sm:$0xff]  ;;  %v107_v5 = vld [vmem:[%s4285_s0 + $0x2d8] sm:$0xff] }
  0x1d   :  { %309 = vadd.xlane.f32.xlu0 %v308_v41  ;;  %v85_v41 = vld [vmem:[%s4285_s0 + $0x228] sm:$0xff]  ;;  %v407_v8 = vadd.f32 %v107_v5, %v106_v4  ;;  %v110_v10 = vld [vmem:[%s4285_s0 + $0x2f0] sm:$0xff]  ;;  %v111_v11 = vld [vmem:[%s4285_s0 + $0x2f8] sm:$0xff] }
  0x1e   :  { %v374_v43 = vadd.f32 %v85_v41, %v84_v40  ;;  %v413_v14 = vadd.f32 %v111_v11, %v110_v10  ;;  %v114_v16 = vld [vmem:[%s4285_s0 + $0x310] sm:$0xff]  ;;  %v115_v17 = vld [vmem:[%s4285_s0 + $0x318] sm:$0xff] }
  0x1f   :  { %v419_v20 = vadd.f32 %v115_v17, %v114_v16  ;;  %v118_v22 = vld [vmem:[%s4285_s0 + $0x330] sm:$0xff]  ;;  %v119_v23 = vld [vmem:[%s4285_s0 + $0x338] sm:$0xff] }
  0x20   :  { %318 = vadd.xlane.f32.xlu1 %v317_v46  ;;  %v88_v46 = vld [vmem:[%s4285_s0 + $0x240] sm:$0xff]  ;;  %v425_v26 = vadd.f32 %v119_v23, %v118_v22  ;;  %v122_v28 = vld [vmem:[%s4285_s0 + $0x350] sm:$0xff]  ;;  %v123_v29 = vld [vmem:[%s4285_s0 + $0x358] sm:$0xff] }
  0x21   :  { %315 = vadd.xlane.f32.xlu0 %v314_v47  ;;  %v89_v47 = vld [vmem:[%s4285_s0 + $0x248] sm:$0xff]  ;;  %v431_v32 = vadd.f32 %v123_v29, %v122_v28  ;;  %v126_v34 = vld [vmem:[%s4285_s0 + $0x370] sm:$0xff]  ;;  %v127_v35 = vld [vmem:[%s4285_s0 + $0x378] sm:$0xff] }
  0x22   :  { %v380_v49 = vadd.f32 %v89_v47, %v88_v46  ;;  %v437_v38 = vadd.f32 %v127_v35, %v126_v34  ;;  %v130_v40 = vld [vmem:[%s4285_s0 + $0x390] sm:$0xff]  ;;  %v131_v41 = vld [vmem:[%s4285_s0 + $0x398] sm:$0xff]  ;;  %v160_v28 = vld [vmem:[%s4285_s0 + $0x480] sm:$0xff] }
  0x23   :  { %v443_v44 = vadd.f32 %v131_v41, %v130_v40  ;;  %v134_v46 = vld [vmem:[%s4285_s0 + $0x3b0] sm:$0xff]  ;;  %v135_v47 = vld [vmem:[%s4285_s0 + $0x3b8] sm:$0xff]  ;;  %v161_v29 = vld [vmem:[%s4285_s0 + $0x488] sm:$0xff] }
  0x24   :  { %324 = vadd.xlane.f32.xlu1 %v323_v52  ;;  %v92_v52 = vld [vmem:[%s4285_s0 + $0x260] sm:$0xff]  ;;  %v449_v50 = vadd.f32 %v135_v47, %v134_v46  ;;  %v167_v34 = vld [vmem:[%s4285_s0 + $0x4b8] sm:$0xff]  ;;  %v170_v41 = vld [vmem:[%s4285_s0 + $0x4d0] sm:$0xff] }
  0x25   :  { %321 = vadd.xlane.f32.xlu0 %v320_v53  ;;  %v93_v53 = vld [vmem:[%s4285_s0 + $0x268] sm:$0xff] }
  0x26   :  { %v386_v55 = vadd.f32 %v93_v53, %v92_v52  ;;  %v138_v52 = vld [vmem:[%s4285_s0 + $0x3d0] sm:$0xff]  ;;  %v139_v53 = vld [vmem:[%s4285_s0 + $0x3d8] sm:$0xff] }
  0x27   :  { %v455_v56 = vadd.f32 %v139_v53, %v138_v52  ;;  %v172_v52 = vld [vmem:[%s4285_s0 + $0x4e0] sm:$0xff]  ;;  %v173_v53 = vld [vmem:[%s4285_s0 + $0x4e8] sm:$0xff] }
  0x28   :  { %330 = vadd.xlane.f32.xlu1 %v329_v58  ;;  %v96_v58 = vld [vmem:[%s4285_s0 + $0x280] sm:$0xff] }
  0x29   :  { %327 = vadd.xlane.f32.xlu0 %v326_v59  ;;  %v97_v59 = vld [vmem:[%s4285_s0 + $0x288] sm:$0xff] }
  0x2a   :  { %v392_v61 = vadd.f32 %v97_v59, %v96_v58  ;;  %v142_v58 = vld [vmem:[%s4285_s0 + $0x3f0] sm:$0xff]  ;;  %v143_v59 = vld [vmem:[%s4285_s0 + $0x3f8] sm:$0xff] }
  0x2b   :  { %v461_v62 = vadd.f32 %v143_v59, %v142_v58  ;;  %v179_v58 = vld [vmem:[%s4285_s0 + $0x518] sm:$0xff] }
  0x2c   :  { %336 = vadd.xlane.f32.xlu1 %v335_v0  ;;  %v100_v0 = vld [vmem:[%s4285_s0 + $0x2a0] sm:$0xff] }
  0x2d   :  { %333 = vadd.xlane.f32.xlu0 %v332_v1  ;;  %v101_v1 = vld [vmem:[%s4285_s0 + $0x2a8] sm:$0xff] }
  0x2e   :  { %v398_v3 = vadd.f32 %v101_v1, %v100_v0  ;;  %v146_v0 = vld [vmem:[%s4285_s0 + $0x410] sm:$0xff]  ;;  %v147_v1 = vld [vmem:[%s4285_s0 + $0x418] sm:$0xff] }
  0x2f   :  { %v467_v4 = vadd.f32 %v147_v1, %v146_v0  ;;  %v182_v1 = vld [vmem:[%s4285_s0 + $0x530] sm:$0xff] }
  0x30   :  { %342 = vadd.xlane.f32.xlu1 %v341_v6  ;;  %v104_v6 = vld [vmem:[%s4285_s0 + $0x2c0] sm:$0xff] }
  0x31   :  { %339 = vadd.xlane.f32.xlu0 %v338_v7  ;;  %v105_v7 = vld [vmem:[%s4285_s0 + $0x2c8] sm:$0xff] }
  0x32   :  { %v404_v9 = vadd.f32 %v105_v7, %v104_v6  ;;  %v150_v6 = vld [vmem:[%s4285_s0 + $0x430] sm:$0xff]  ;;  %v151_v7 = vld [vmem:[%s4285_s0 + $0x438] sm:$0xff] }
  0x33   :  { %v473_v10 = vadd.f32 %v151_v7, %v150_v6 }
  0x34   :  { %348 = vadd.xlane.f32.xlu1 %v347_v12  ;;  %v108_v12 = vld [vmem:[%s4285_s0 + $0x2e0] sm:$0xff] }
  0x35   :  { %345 = vadd.xlane.f32.xlu0 %v344_v13  ;;  %v109_v13 = vld [vmem:[%s4285_s0 + $0x2e8] sm:$0xff] }
  0x36   :  { %v410_v15 = vadd.f32 %v109_v13, %v108_v12  ;;  %v154_v12 = vld [vmem:[%s4285_s0 + $0x450] sm:$0xff]  ;;  %v155_v13 = vld [vmem:[%s4285_s0 + $0x458] sm:$0xff] }
  0x37   :  { %v479_v16 = vadd.f32 %v155_v13, %v154_v12  ;;  %v184_v12 = vld [vmem:[%s4285_s0 + $0x540] sm:$0xff]  ;;  %v185_v13 = vld [vmem:[%s4285_s0 + $0x548] sm:$0xff] }
  0x38   :  { %354 = vadd.xlane.f32.xlu1 %v353_v18  ;;  %v112_v18 = vld [vmem:[%s4285_s0 + $0x300] sm:$0xff] }
  0x39   :  { %351 = vadd.xlane.f32.xlu0 %v350_v19  ;;  %v113_v19 = vld [vmem:[%s4285_s0 + $0x308] sm:$0xff] }
  0x3a   :  { %v416_v21 = vadd.f32 %v113_v19, %v112_v18  ;;  %v158_v18 = vld [vmem:[%s4285_s0 + $0x470] sm:$0xff]  ;;  %v159_v19 = vld [vmem:[%s4285_s0 + $0x478] sm:$0xff] }
  0x3b   :  { %v485_v22 = vadd.f32 %v159_v19, %v158_v18  ;;  %v191_v18 = vld [vmem:[%s4285_s0 + $0x578] sm:$0xff] }
  0x3c   :  { %360 = vadd.xlane.f32.xlu1 %v359_v24  ;;  %v116_v24 = vld [vmem:[%s4285_s0 + $0x320] sm:$0xff] }
  0x3d   :  { %357 = vadd.xlane.f32.xlu0 %v356_v25  ;;  %v117_v25 = vld [vmem:[%s4285_s0 + $0x328] sm:$0xff] }
  0x3e   :  { %v422_v27 = vadd.f32 %v117_v25, %v116_v24  ;;  %v162_v25 = vld [vmem:[%s4285_s0 + $0x490] sm:$0xff] }
  0x40   :  { %366 = vadd.xlane.f32.xlu1 %v365_v30  ;;  %v120_v30 = vld [vmem:[%s4285_s0 + $0x340] sm:$0xff] }
  0x41   :  { %363 = vadd.xlane.f32.xlu0 %v362_v31  ;;  %v121_v31 = vld [vmem:[%s4285_s0 + $0x348] sm:$0xff] }
  0x42   :  { %v428_v33 = vadd.f32 %v121_v31, %v120_v30 }
  0x44   :  { %372 = vadd.xlane.f32.xlu1 %v371_v36  ;;  %v124_v36 = vld [vmem:[%s4285_s0 + $0x360] sm:$0xff] }
  0x45   :  { %369 = vadd.xlane.f32.xlu0 %v368_v37  ;;  %v125_v37 = vld [vmem:[%s4285_s0 + $0x368] sm:$0xff] }
  0x46   :  { %v434_v39 = vadd.f32 %v125_v37, %v124_v36  ;;  %v164_v36 = vld [vmem:[%s4285_s0 + $0x4a0] sm:$0xff]  ;;  %v165_v37 = vld [vmem:[%s4285_s0 + $0x4a8] sm:$0xff] }
  0x47   :  { %v494_v40 = vadd.f32 %v165_v37, %v164_v36  ;;  %v198_v37 = vld [vmem:[%s4285_s0 + $0x5b0] sm:$0xff] }
  0x48   :  { %378 = vadd.xlane.f32.xlu1 %v377_v42  ;;  %v128_v42 = vld [vmem:[%s4285_s0 + $0x380] sm:$0xff] }
  0x49   :  { %375 = vadd.xlane.f32.xlu0 %v374_v43  ;;  %v129_v43 = vld [vmem:[%s4285_s0 + $0x388] sm:$0xff] }
  0x4a   :  { %v440_v45 = vadd.f32 %v129_v43, %v128_v42  ;;  %v171_v42 = vld [vmem:[%s4285_s0 + $0x4d8] sm:$0xff] }
  0x4b   :  { %v503_v46 = vadd.f32 %v171_v42, %v170_v41  ;;  %v196_v41 = vld [vmem:[%s4285_s0 + $0x5a0] sm:$0xff]  ;;  %v197_v42 = vld [vmem:[%s4285_s0 + $0x5a8] sm:$0xff] }
  0x4c   :  { %384 = vadd.xlane.f32.xlu1 %v383_v48  ;;  %v132_v48 = vld [vmem:[%s4285_s0 + $0x3a0] sm:$0xff] }
  0x4d   :  { %381 = vadd.xlane.f32.xlu0 %v380_v49  ;;  %v133_v49 = vld [vmem:[%s4285_s0 + $0x3a8] sm:$0xff] }
  0x4e   :  { %v446_v51 = vadd.f32 %v133_v49, %v132_v48  ;;  %v174_v49 = vld [vmem:[%s4285_s0 + $0x4f0] sm:$0xff] }
  0x50   :  { %390 = vadd.xlane.f32.xlu1 %v389_v54  ;;  %v136_v54 = vld [vmem:[%s4285_s0 + $0x3c0] sm:$0xff] }
  0x51   :  { %387 = vadd.xlane.f32.xlu0 %v386_v55  ;;  %v137_v55 = vld [vmem:[%s4285_s0 + $0x3c8] sm:$0xff] }
  0x52   :  { %v452_v57 = vadd.f32 %v137_v55, %v136_v54 }
  0x54   :  { %396 = vadd.xlane.f32.xlu1 %v395_v60  ;;  %v140_v60 = vld [vmem:[%s4285_s0 + $0x3e0] sm:$0xff] }
  0x55   :  { %393 = vadd.xlane.f32.xlu0 %v392_v61  ;;  %v141_v61 = vld [vmem:[%s4285_s0 + $0x3e8] sm:$0xff] }
  0x56   :  { %v458_v63 = vadd.f32 %v141_v61, %v140_v60  ;;  %v176_v60 = vld [vmem:[%s4285_s0 + $0x500] sm:$0xff]  ;;  %v177_v61 = vld [vmem:[%s4285_s0 + $0x508] sm:$0xff] }
  0x57   :  { %v512_v0 = vadd.f32 %v177_v61, %v176_v60  ;;  %v207_v60 = vld [vmem:[%s4285_s0 + $0x5f8] sm:$0xff] }
  0x58   :  { %402 = vadd.xlane.f32.xlu1 %v401_v2  ;;  %v144_v2 = vld [vmem:[%s4285_s0 + $0x400] sm:$0xff] }
  0x59   :  { %399 = vadd.xlane.f32.xlu0 %v398_v3  ;;  %v145_v3 = vld [vmem:[%s4285_s0 + $0x408] sm:$0xff] }
  0x5a   :  { %v464_v5 = vadd.f32 %v145_v3, %v144_v2  ;;  %v183_v2 = vld [vmem:[%s4285_s0 + $0x538] sm:$0xff] }
  0x5b   :  { %v521_v6 = vadd.f32 %v183_v2, %v182_v1 }
  0x5c   :  { %408 = vadd.xlane.f32.xlu1 %v407_v8  ;;  %v148_v8 = vld [vmem:[%s4285_s0 + $0x420] sm:$0xff] }
  0x5d   :  { %405 = vadd.xlane.f32.xlu0 %v404_v9  ;;  %v149_v9 = vld [vmem:[%s4285_s0 + $0x428] sm:$0xff] }
  0x5e   :  { %v470_v11 = vadd.f32 %v149_v9, %v148_v8  ;;  %v186_v9 = vld [vmem:[%s4285_s0 + $0x550] sm:$0xff] }
  0x60   :  { %414 = vadd.xlane.f32.xlu1 %v413_v14  ;;  %v152_v14 = vld [vmem:[%s4285_s0 + $0x440] sm:$0xff] }
  0x61   :  { %411 = vadd.xlane.f32.xlu0 %v410_v15  ;;  %v153_v15 = vld [vmem:[%s4285_s0 + $0x448] sm:$0xff] }
  0x62   :  { %v476_v17 = vadd.f32 %v153_v15, %v152_v14 }
  0x64   :  { %420 = vadd.xlane.f32.xlu1 %v419_v20  ;;  %v156_v20 = vld [vmem:[%s4285_s0 + $0x460] sm:$0xff] }
  0x65   :  { %417 = vadd.xlane.f32.xlu0 %v416_v21  ;;  %v157_v21 = vld [vmem:[%s4285_s0 + $0x468] sm:$0xff] }
  0x66   :  { %v482_v24 = vadd.f32 %v157_v21, %v156_v20  ;;  %v188_v20 = vld [vmem:[%s4285_s0 + $0x560] sm:$0xff]  ;;  %v189_v21 = vld [vmem:[%s4285_s0 + $0x568] sm:$0xff] }
  0x68   :  { %426 = vadd.xlane.f32.xlu1 %v425_v26  ;;  %v163_v26 = vld [vmem:[%s4285_s0 + $0x498] sm:$0xff] }
  0x69   :  { %423 = vadd.xlane.f32.xlu0 %v422_v27  ;;  %v491_v30 = vadd.f32 %v163_v26, %v162_v25  ;;  %v530_v25 = vadd.f32 %v189_v21, %v188_v20  ;;  %v194_v26 = vld [vmem:[%s4285_s0 + $0x590] sm:$0xff]  ;;  %v212_v20 = vld [vmem:[%s4285_s0 + $0x620] sm:$0xff]  ;;  %v213_v21 = vld [vmem:[%s4285_s0 + $0x628] sm:$0xff] }
  0x6c   :  { %432 = vadd.xlane.f32.xlu1 %v431_v32  ;;  %v488_v32 = vadd.f32 %v161_v29, %v160_v28  ;;  %v195_v28 = vld [vmem:[%s4285_s0 + $0x598] sm:$0xff] }
  0x6d   :  { %429 = vadd.xlane.f32.xlu0 %v428_v33  ;;  %v166_v33 = vld [vmem:[%s4285_s0 + $0x4b0] sm:$0xff] }
  0x70   :  { %438 = vadd.xlane.f32.xlu1 %v437_v38  ;;  %v497_v38 = vadd.f32 %v167_v34, %v166_v33  ;;  %v539_v33 = vadd.f32 %v195_v28, %v194_v26  ;;  %v566_v26 = vadd.f32 %v213_v21, %v212_v20  ;;  %v218_v28 = vld [vmem:[%s4285_s0 + $0x650] sm:$0xff] }
  0x71   :  { %435 = vadd.xlane.f32.xlu0 %v434_v39  ;;  %v234_v21 = vld [vmem:[%s4285_s0 + $0x6d0] sm:$0xff] }
  0x74   :  { %444 = vadd.xlane.f32.xlu1 %v443_v44  ;;  %v168_v44 = vld [vmem:[%s4285_s0 + $0x4c0] sm:$0xff] }
  0x75   :  { %441 = vadd.xlane.f32.xlu0 %v440_v45  ;;  %v169_v45 = vld [vmem:[%s4285_s0 + $0x4c8] sm:$0xff] }
  0x76   :  { %v500_v48 = vadd.f32 %v169_v45, %v168_v44 }
  0x78   :  { %450 = vadd.xlane.f32.xlu1 %v449_v50  ;;  %v175_v50 = vld [vmem:[%s4285_s0 + $0x4f8] sm:$0xff] }
  0x79   :  { %447 = vadd.xlane.f32.xlu0 %v446_v51  ;;  %v509_v54 = vadd.f32 %v175_v50, %v174_v49  ;;  %v203_v49 = vld [vmem:[%s4285_s0 + $0x5d8] sm:$0xff] }
  0x7c   :  { %456 = vadd.xlane.f32.xlu1 %v455_v56  ;;  %v506_v56 = vadd.f32 %v173_v53, %v172_v52  ;;  %v200_v52 = vld [vmem:[%s4285_s0 + $0x5c0] sm:$0xff]  ;;  %v201_v53 = vld [vmem:[%s4285_s0 + $0x5c8] sm:$0xff] }
  0x7d   :  { %453 = vadd.xlane.f32.xlu0 %v452_v57  ;;  %v178_v57 = vld [vmem:[%s4285_s0 + $0x510] sm:$0xff] }
  0x80   :  { %462 = vadd.xlane.f32.xlu1 %v461_v62  ;;  %v515_v62 = vadd.f32 %v179_v58, %v178_v57  ;;  %v548_v57 = vadd.f32 %v201_v53, %v200_v52  ;;  %v206_v58 = vld [vmem:[%s4285_s0 + $0x5f0] sm:$0xff] }
  0x81   :  { %459 = vadd.xlane.f32.xlu0 %v458_v63  ;;  %v557_v1 = vadd.f32 %v207_v60, %v206_v58  ;;  %v227_v58 = vld [vmem:[%s4285_s0 + $0x698] sm:$0xff] }
  0x84   :  { %468 = vadd.xlane.f32.xlu1 %v467_v4  ;;  %v180_v4 = vld [vmem:[%s4285_s0 + $0x520] sm:$0xff] }
  0x85   :  { %465 = vadd.xlane.f32.xlu0 %v464_v5  ;;  %v181_v5 = vld [vmem:[%s4285_s0 + $0x528] sm:$0xff] }
  0x86   :  { %v518_v8 = vadd.f32 %v181_v5, %v180_v4  ;;  %v210_v5 = vld [vmem:[%s4285_s0 + $0x610] sm:$0xff] }
  0x88   :  { %474 = vadd.xlane.f32.xlu1 %v473_v10  ;;  %v187_v10 = vld [vmem:[%s4285_s0 + $0x558] sm:$0xff] }
  0x89   :  { %471 = vadd.xlane.f32.xlu0 %v470_v11  ;;  %v527_v14 = vadd.f32 %v187_v10, %v186_v9  ;;  %v208_v9 = vld [vmem:[%s4285_s0 + $0x600] sm:$0xff]  ;;  %v209_v10 = vld [vmem:[%s4285_s0 + $0x608] sm:$0xff] }
  0x8c   :  { %480 = vadd.xlane.f32.xlu1 %v479_v16  ;;  %v524_v16 = vadd.f32 %v185_v13, %v184_v12 }
  0x8d   :  { %477 = vadd.xlane.f32.xlu0 %v476_v17  ;;  %v2784_v23 = vpop.xlane.xlu1 %279  ;;  %v190_v17 = vld [vmem:[%s4285_s0 + $0x570] sm:$0xff] }
  0x8e   :  { %v2792_v27 = vpop.xlane.xlu0 %273 }
  0x90   :  { %486 = vadd.xlane.f32.xlu1 %v485_v22  ;;  %v533_v22 = vadd.f32 %v191_v18, %v190_v17  ;;  %v215_v17 = vld [vmem:[%s4285_s0 + $0x638] sm:$0xff] }
  0x91   :  { %483 = vadd.xlane.f32.xlu0 %v482_v24  ;;  %v2800_v31 = vpop.xlane.xlu1 %282 }
  0x92   :  { %v2808_v35 = vpop.xlane.xlu0 %276 }
  0x94   :  { %492 = vadd.xlane.f32.xlu1 %v491_v30  ;;  %v192_v30 = vld [vmem:[%s4285_s0 + $0x580] sm:$0xff] }
  0x95   :  { %489 = vadd.xlane.f32.xlu0 %v488_v32  ;;  %v2816_v39 = vpop.xlane.xlu1 %288  ;;  %v193_v32 = vld [vmem:[%s4285_s0 + $0x588] sm:$0xff] }
  0x96   :  { %v2824_v43 = vpop.xlane.xlu0 %285  ;;  %v536_v36 = vadd.f32 %v193_v32, %v192_v30  ;;  %v219_v30 = vld [vmem:[%s4285_s0 + $0x658] sm:$0xff] }
  0x98   :  { %498 = vadd.xlane.f32.xlu1 %v497_v38  ;;  %v199_v38 = vld [vmem:[%s4285_s0 + $0x5b8] sm:$0xff] }
  0x99   :  { %495 = vadd.xlane.f32.xlu0 %v494_v40  ;;  %v2832_v47 = vpop.xlane.xlu1 %294  ;;  %v545_v44 = vadd.f32 %v199_v38, %v198_v37  ;;  %v575_v37 = vadd.f32 %v219_v30, %v218_v28  ;;  %v232_v28 = vld [vmem:[%s4285_s0 + $0x6c0] sm:$0xff]  ;;  %v233_v30 = vld [vmem:[%s4285_s0 + $0x6c8] sm:$0xff] }
  0x9a   :  { %v2840_v51 = vpop.xlane.xlu0 %291 }
  0x9c   :  { %504 = vadd.xlane.f32.xlu1 %v503_v46  ;;  %v542_v46 = vadd.f32 %v197_v42, %v196_v41  ;;  %v222_v42 = vld [vmem:[%s4285_s0 + $0x670] sm:$0xff] }
  0x9d   :  { %501 = vadd.xlane.f32.xlu0 %v500_v48  ;;  %v2848_v55 = vpop.xlane.xlu1 %300  ;;  %v202_v48 = vld [vmem:[%s4285_s0 + $0x5d0] sm:$0xff] }
  0x9e   :  { %v2856_v59 = vpop.xlane.xlu0 %297 }
  0xa0   :  { %510 = vadd.xlane.f32.xlu1 %v509_v54  ;;  %v551_v54 = vadd.f32 %v203_v49, %v202_v48  ;;  %v220_v48 = vld [vmem:[%s4285_s0 + $0x660] sm:$0xff]  ;;  %v221_v49 = vld [vmem:[%s4285_s0 + $0x668] sm:$0xff] }
  0xa1   :  { %507 = vadd.xlane.f32.xlu0 %v506_v56  ;;  %v2864_v63 = vpop.xlane.xlu1 %306 }
  0xa2   :  { %v2872_v3 = vpop.xlane.xlu0 %303 }
  0xa4   :  { %516 = vadd.xlane.f32.xlu1 %v515_v62  ;;  %v204_v62 = vld [vmem:[%s4285_s0 + $0x5e0] sm:$0xff] }
  0xa5   :  { %513 = vadd.xlane.f32.xlu0 %v512_v0  ;;  %v2880_v7 = vpop.xlane.xlu1 %312  ;;  %v205_v0 = vld [vmem:[%s4285_s0 + $0x5e8] sm:$0xff] }
  0xa6   :  { %v2888_v11 = vpop.xlane.xlu0 %309  ;;  %v554_v4 = vadd.f32 %v205_v0, %v204_v62  ;;  %v224_v62 = vld [vmem:[%s4285_s0 + $0x680] sm:$0xff]  ;;  %v225_v0 = vld [vmem:[%s4285_s0 + $0x688] sm:$0xff] }
  0xa8   :  { %522 = vadd.xlane.f32.xlu1 %v521_v6  ;;  %v211_v6 = vld [vmem:[%s4285_s0 + $0x618] sm:$0xff] }
  0xa9   :  { %519 = vadd.xlane.f32.xlu0 %v518_v8  ;;  %v2896_v15 = vpop.xlane.xlu1 %318  ;;  %v563_v12 = vadd.f32 %v211_v6, %v210_v5  ;;  %v584_v5 = vadd.f32 %v225_v0, %v224_v62  ;;  %v230_v6 = vld [vmem:[%s4285_s0 + $0x6b0] sm:$0xff]  ;;  %v243_v62 = vld [vmem:[%s4285_s0 + $0x718] sm:$0xff] }
  0xaa   :  { %v2904_v19 = vpop.xlane.xlu0 %315 }
  0xac   :  { %528 = vadd.xlane.f32.xlu1 %v527_v14  ;;  %v560_v14 = vadd.f32 %v209_v10, %v208_v9  ;;  %v231_v9 = vld [vmem:[%s4285_s0 + $0x6b8] sm:$0xff] }
  0xad   :  { %525 = vadd.xlane.f32.xlu0 %v524_v16  ;;  %v2912_v24 = vpop.xlane.xlu1 %324  ;;  %v214_v16 = vld [vmem:[%s4285_s0 + $0x630] sm:$0xff] }
  0xae   :  { %v2920_v29 = vpop.xlane.xlu0 %321 }
  0xb0   :  { %534 = vadd.xlane.f32.xlu1 %v533_v22  ;;  %v569_v22 = vadd.f32 %v215_v17, %v214_v16  ;;  %v593_v16 = vadd.f32 %v231_v9, %v230_v6 }
  0xb1   :  { %531 = vadd.xlane.f32.xlu0 %v530_v25  ;;  %v2928_v34 = vpop.xlane.xlu1 %330 }
  0xb2   :  { %v2936_v40 = vpop.xlane.xlu0 %327 }
  0xb4   :  { %540 = vadd.xlane.f32.xlu1 %v539_v33  ;;  %v216_v33 = vld [vmem:[%s4285_s0 + $0x640] sm:$0xff] }
  0xb5   :  { %537 = vadd.xlane.f32.xlu0 %v536_v36  ;;  %v2944_v45 = vpop.xlane.xlu1 %336  ;;  %v217_v36 = vld [vmem:[%s4285_s0 + $0x648] sm:$0xff] }
  0xb6   :  { %v2952_v50 = vpop.xlane.xlu0 %333  ;;  %v572_v41 = vadd.f32 %v217_v36, %v216_v33 }
  0xb8   :  { %546 = vadd.xlane.f32.xlu1 %v545_v44  ;;  %v223_v44 = vld [vmem:[%s4285_s0 + $0x678] sm:$0xff] }
  0xb9   :  { %543 = vadd.xlane.f32.xlu0 %v542_v46  ;;  %v2960_v56 = vpop.xlane.xlu1 %342  ;;  %v581_v52 = vadd.f32 %v223_v44, %v222_v42  ;;  %v239_v42 = vld [vmem:[%s4285_s0 + $0x6f8] sm:$0xff] }
  0xba   :  { %v2968_v61 = vpop.xlane.xlu0 %339 }
  0xbc   :  { %552 = vadd.xlane.f32.xlu1 %v551_v54  ;;  %v578_v54 = vadd.f32 %v221_v49, %v220_v48  ;;  %v236_v48 = vld [vmem:[%s4285_s0 + $0x6e0] sm:$0xff]  ;;  %v237_v49 = vld [vmem:[%s4285_s0 + $0x6e8] sm:$0xff] }
  0xbd   :  { %549 = vadd.xlane.f32.xlu0 %v548_v57  ;;  %v2976_v2 = vpop.xlane.xlu1 %348  ;;  %v226_v57 = vld [vmem:[%s4285_s0 + $0x690] sm:$0xff] }
  0xbe   :  { %v2984_v8 = vpop.xlane.xlu0 %345 }
  0xc0   :  { %558 = vadd.xlane.f32.xlu1 %v557_v1  ;;  %v587_v1 = vadd.f32 %v227_v58, %v226_v57  ;;  %v602_v57 = vadd.f32 %v237_v49, %v236_v48  ;;  %v242_v58 = vld [vmem:[%s4285_s0 + $0x710] sm:$0xff]  ;;  %v248_v48 = vld [vmem:[%s4285_s0 + $0x740] sm:$0xff]  ;;  %v249_v49 = vld [vmem:[%s4285_s0 + $0x748] sm:$0xff] }
  0xc1   :  { %555 = vadd.xlane.f32.xlu0 %v554_v4  ;;  %v2992_v13 = vpop.xlane.xlu1 %354  ;;  %v611_v6 = vadd.f32 %v243_v62, %v242_v58  ;;  %v620_v58 = vadd.f32 %v249_v49, %v248_v48  ;;  %v254_v62 = vld [vmem:[%s4285_s0 + $0x770] sm:$0xff] }
  0xc2   :  { %v3000_v18 = vpop.xlane.xlu0 %351 }
  0xc4   :  { %564 = vadd.xlane.f32.xlu1 %v563_v12  ;;  %v228_v12 = vld [vmem:[%s4285_s0 + $0x6a0] sm:$0xff] }
  0xc5   :  { %561 = vadd.xlane.f32.xlu0 %v560_v14  ;;  %v3008_v25 = vpop.xlane.xlu1 %360  ;;  %v229_v14 = vld [vmem:[%s4285_s0 + $0x6a8] sm:$0xff] }
  0xc6   :  { %v3016_v32 = vpop.xlane.xlu0 %357  ;;  %v590_v20 = vadd.f32 %v229_v14, %v228_v12  ;;  %v246_v14 = vld [vmem:[%s4285_s0 + $0x730] sm:$0xff] }
  0xc8   :  { %570 = vadd.xlane.f32.xlu1 %v569_v22  ;;  %v235_v22 = vld [vmem:[%s4285_s0 + $0x6d8] sm:$0xff] }
  0xc9   :  { %567 = vadd.xlane.f32.xlu0 %v566_v26  ;;  %v3024_v38 = vpop.xlane.xlu1 %366  ;;  %v599_v33 = vadd.f32 %v235_v22, %v234_v21  ;;  %v244_v21 = vld [vmem:[%s4285_s0 + $0x720] sm:$0xff]  ;;  %v245_v22 = vld [vmem:[%s4285_s0 + $0x728] sm:$0xff] }
  0xca   :  { %v3032_v46 = vpop.xlane.xlu0 %363 }
  0xcc   :  { %576 = vadd.xlane.f32.xlu1 %v575_v37  ;;  %v596_v37 = vadd.f32 %v233_v30, %v232_v28 }
  0xcd   :  { %573 = vadd.xlane.f32.xlu0 %v572_v41  ;;  %v3040_v53 = vpop.xlane.xlu1 %372  ;;  %v238_v41 = vld [vmem:[%s4285_s0 + $0x6f0] sm:$0xff] }
  0xce   :  { %v3048_v60 = vpop.xlane.xlu0 %369 }
  0xd0   :  { %582 = vadd.xlane.f32.xlu1 %v581_v52  ;;  %v605_v52 = vadd.f32 %v239_v42, %v238_v41  ;;  %v251_v41 = vld [vmem:[%s4285_s0 + $0x758] sm:$0xff] }
  0xd1   :  { %579 = vadd.xlane.f32.xlu0 %v578_v54  ;;  %v3056_v4 = vpop.xlane.xlu1 %378 }
  0xd2   :  { %v3064_v10 = vpop.xlane.xlu0 %375 }
  0xd4   :  { %588 = vadd.xlane.f32.xlu1 %v587_v1  ;;  %v240_v1 = vld [vmem:[%s4285_s0 + $0x700] sm:$0xff] }
  0xd5   :  { %585 = vadd.xlane.f32.xlu0 %v584_v5  ;;  %v3072_v17 = vpop.xlane.xlu1 %384  ;;  %v241_v5 = vld [vmem:[%s4285_s0 + $0x708] sm:$0xff] }
  0xd6   :  { %v3080_v26 = vpop.xlane.xlu0 %381  ;;  %v608_v12 = vadd.f32 %v241_v5, %v240_v1  ;;  %v255_v1 = vld [vmem:[%s4285_s0 + $0x778] sm:$0xff] }
  0xd8   :  { %594 = vadd.xlane.f32.xlu1 %v593_v16  ;;  %v247_v16 = vld [vmem:[%s4285_s0 + $0x738] sm:$0xff] }
  0xd9   :  { %591 = vadd.xlane.f32.xlu0 %v590_v20  ;;  %v3088_v36 = vpop.xlane.xlu1 %390  ;;  %v617_v28 = vadd.f32 %v247_v16, %v246_v14  ;;  %v629_v14 = vadd.f32 %v255_v1, %v254_v62  ;;  %v263_v62 = vld [vmem:[%s4285_s0 + $0x7b8] sm:$0xff] }
  0xda   :  { %v3096_v44 = vpop.xlane.xlu0 %387 }
  0xdc   :  { %600 = vadd.xlane.f32.xlu1 %v599_v33  ;;  %v614_v33 = vadd.f32 %v245_v22, %v244_v21  ;;  %v258_v22 = vld [vmem:[%s4285_s0 + $0x790] sm:$0xff] }
  0xdd   :  { %597 = vadd.xlane.f32.xlu0 %v596_v37  ;;  %v3104_v54 = vpop.xlane.xlu1 %396  ;;  %v250_v37 = vld [vmem:[%s4285_s0 + $0x750] sm:$0xff] }
  0xde   :  { %v3112_v0 = vpop.xlane.xlu0 %393 }
  0xe0   :  { %606 = vadd.xlane.f32.xlu1 %v605_v52  ;;  %v623_v52 = vadd.f32 %v251_v41, %v250_v37  ;;  %v256_v37 = vld [vmem:[%s4285_s0 + $0x780] sm:$0xff]  ;;  %v257_v41 = vld [vmem:[%s4285_s0 + $0x788] sm:$0xff] }
  0xe1   :  { %603 = vadd.xlane.f32.xlu0 %v602_v57  ;;  %v3120_v9 = vpop.xlane.xlu1 %402 }
  0xe2   :  { %v3128_v20 = vpop.xlane.xlu0 %399 }
  0xe4   :  { %612 = vadd.xlane.f32.xlu1 %v611_v6  ;;  %v252_v6 = vld [vmem:[%s4285_s0 + $0x760] sm:$0xff] }
  0xe5   :  { %609 = vadd.xlane.f32.xlu0 %v608_v12  ;;  %v3136_v30 = vpop.xlane.xlu1 %408  ;;  %v253_v12 = vld [vmem:[%s4285_s0 + $0x768] sm:$0xff] }
  0xe6   :  { %v3144_v42 = vpop.xlane.xlu0 %405  ;;  %v626_v21 = vadd.f32 %v253_v12, %v252_v6  ;;  %v260_v6 = vld [vmem:[%s4285_s0 + $0x7a0] sm:$0xff]  ;;  %v261_v12 = vld [vmem:[%s4285_s0 + $0x7a8] sm:$0xff] }
  0xe8   :  { %618 = vadd.xlane.f32.xlu1 %v617_v28  ;;  %v259_v28 = vld [vmem:[%s4285_s0 + $0x798] sm:$0xff] }
  0xe9   :  { %615 = vadd.xlane.f32.xlu0 %v614_v33  ;;  %v3152_v57 = vpop.xlane.xlu1 %414  ;;  %v635_v48 = vadd.f32 %v259_v28, %v258_v22  ;;  %v638_v22 = vadd.f32 %v261_v12, %v260_v6  ;;  %v266_v28 = vld [vmem:[%s4285_s0 + $0x7d0] sm:$0xff]  ;;  %v271_v12 = vld [vmem:[%s4285_s0 + $0x7f8] sm:$0xff] }
  0xea   :  { %v3160_v5 = vpop.xlane.xlu0 %411  ;;  %v270_v6 = vld [vmem:[%s4285_s0 + $0x7f0] sm:$0xff] }
  0xec   :  { %624 = vadd.xlane.f32.xlu1 %v623_v52  ;;  %v632_v52 = vadd.f32 %v257_v41, %v256_v37  ;;  %v267_v37 = vld [vmem:[%s4285_s0 + $0x7d8] sm:$0xff] }
  0xed   :  { %621 = vadd.xlane.f32.xlu0 %v620_v58  ;;  %v3168_v16 = vpop.xlane.xlu1 %420  ;;  %v262_v58 = vld [vmem:[%s4285_s0 + $0x7b0] sm:$0xff] }
  0xee   :  { %v3176_v33 = vpop.xlane.xlu0 %417 }
  0xef   :  { %4306 = vst [vmem:[#allocation3_spill] sm:$0xff] %v3176_v33 }
  0xf0   :  { %630 = vadd.xlane.f32.xlu1 %v629_v14  ;;  %v641_v14 = vadd.f32 %v263_v62, %v262_v58 }
  0xf1   :  { %627 = vadd.xlane.f32.xlu0 %v626_v21  ;;  %v3184_v49 = vpop.xlane.xlu1 %426 }
  0xf2   :  { %4307 = vst [vmem:[#allocation4_spill] sm:$0xff] %v3184_v49  ;;  %v3192_v1 = vpop.xlane.xlu0 %423 }
  0xf3   :  { %4308 = vst [vmem:[#allocation5_spill] sm:$0xff] %v3192_v1  ;;  %v264_v1 = vld [vmem:[%s4285_s0 + $0x7c0] sm:$0xff] }
  0xf4   :  { %636 = vadd.xlane.f32.xlu1 %v635_v48  ;;  %v265_v48 = vld [vmem:[%s4285_s0 + $0x7c8] sm:$0xff] }
  0xf5   :  { %633 = vadd.xlane.f32.xlu0 %v632_v52  ;;  %v3200_v21 = vpop.xlane.xlu1 %432  ;;  %v647_v52 = vadd.f32 %v267_v37, %v266_v28  ;;  %v644_v62 = vadd.f32 %v265_v48, %v264_v1  ;;  %v653_v1 = vadd.f32 %v271_v12, %v270_v6  ;;  %v3255_v12 = vld [vmem:[%s4286_s1] sm:$0xf] }
  0xf6   :  { %4309 = vst [vmem:[#allocation6_spill] sm:$0xff] %v3200_v21  ;;  %v3208_v41 = vpop.xlane.xlu0 %429  ;;  %v268_v21 = vld [vmem:[%s4285_s0 + $0x7e0] sm:$0xff] }
  0xf7   :  { %4310 = vst [vmem:[#allocation7_spill] sm:$0xff] %v3208_v41 }
  0xf8   :  { %642 = vadd.xlane.f32.xlu1 %v641_v14  ;;  %v269_v14 = vld [vmem:[%s4285_s0 + $0x7e8] sm:$0xff] }
  0xf9   :  { %639 = vadd.xlane.f32.xlu0 %v638_v22  ;;  %v3216_v58 = vpop.xlane.xlu1 %438  ;;  %v650_v28 = vadd.f32 %v269_v14, %v268_v21 }
  0xfa   :  { %4311 = vst [vmem:[#allocation8_spill] sm:$0xff] %v3216_v58  ;;  %v3224_v41 = vpop.xlane.xlu0 %435 }
  0xfb   :  { %4312 = vst [vmem:[#allocation9_spill] sm:$0xff] %v3224_v41  ;;  %v4289_v41 = vlaneseq }
  0xfc   :  { %648 = vadd.xlane.f32.xlu1 %v647_v52 }
  0xfd   :  { %645 = vadd.xlane.f32.xlu0 %v644_v62  ;;  %v3232_v22 = vpop.xlane.xlu1 %444  ;;  %v3243_v33 = vshrl.u32 %v4289_v41, 7  ;;  %v2331_v41 = vmov 0  }
  0xfe   :  { %v3234_v37 = vpop.xlane.xlu0 %441  ;;  %2329 = vset.pattern.permute.xlu0 %v2331_v41  ;;  %2330 = vset.pattern.permute.xlu1 %v2331_v41 }
  0xff   :  { %4315 = vst [vmem:[#allocation12_spill] sm:$0xff] %v3243_v33  ;;  %v660_v21 = vsub.s32 0, %v3243_v33 }
 0x100   :  { %654 = vadd.xlane.f32.xlu1 %v653_v1 }
 0x101   :  { %651 = vadd.xlane.f32.xlu0 %v650_v28  ;;  %v3236_v48 = vpop.xlane.xlu1 %450  ;;  %v661_v1 = vrot.slane %v3255_v12, %v660_v21 }
 0x102   :  { %v3238_v58 = vpop.xlane.xlu0 %447 }
 0x103   :  { %4313 = vst [vmem:[#allocation10_spill] sm:$0xff] %v3238_v58 }
 0x105   :  { %v3240_v49 = vpop.xlane.xlu1 %456 }
 0x106   :  { %4314 = vst [vmem:[#allocation11_spill] sm:$0xff] %v3240_v49  ;;  %v3245_v52 = vpop.xlane.xlu0 %453 }
 0x107   :  { %4316 = vst [vmem:[#allocation13_spill] sm:$0xff] %v3245_v52 }
 0x109   :  { %v3247_v62 = vpop.xlane.xlu1 %462 }
 0x10a   :  { %4317 = vst [vmem:[#allocation14_spill] sm:$0xff] %v3247_v62  ;;  %v3250_v6 = vpop.xlane.xlu0 %459 }
 0x10b   :  { %4318 = vst [vmem:[#allocation15_spill] sm:$0xff] %v3250_v6 }
 0x10d   :  { %v3257_v14 = vpop.xlane.xlu1 %468 }
 0x10e   :  { %4319 = vst [vmem:[#allocation16_spill] sm:$0xff] %v3257_v14  ;;  %v3260_v28 = vpop.xlane.xlu0 %465 }
 0x10f   :  { %4320 = vst [vmem:[#allocation17_spill] sm:$0xff] %v3260_v28 }
 0x111   :  { %679 = vbcast.lane.b32.xlu1 %v661_v1, 264  ;;  %v3262_v62 = vpop.xlane.xlu1 %474 }
 0x112   :  { %4321 = vst [vmem:[#allocation18_spill] sm:$0xff] %v3262_v62  ;;  %v3264_v52 = vpop.xlane.xlu0 %471 }
 0x113   :  { %4322 = vst [vmem:[#allocation19_spill] sm:$0xff] %v3264_v52 }
 0x115   :  { %683 = vbcast.lane.b32.xlu1 %v661_v1, 272  ;;  %v3266_v6 = vpop.xlane.xlu1 %480 }
 0x116   :  { %4323 = vst [vmem:[#allocation20_spill] sm:$0xff] %v3266_v6  ;;  %v3268_v49 = vpop.xlane.xlu0 %477 }
 0x117   :  { %4324 = vst [vmem:[#allocation21_spill] sm:$0xff] %v3268_v49  ;;  %675 = vbcast.lane.b32.xlu0 %v661_v1, 256 }
 0x119   :  { %687 = vbcast.lane.b32.xlu1 %v661_v1, 280  ;;  %v3270_v14 = vpop.xlane.xlu1 %486 }
 0x11a   :  { %4325 = vst [vmem:[#allocation22_spill] sm:$0xff] %v3270_v14  ;;  %v3272_v21 = vpop.xlane.xlu0 %483 }
 0x11b   :  { %4326 = vst [vmem:[#allocation23_spill] sm:$0xff] %v3272_v21  ;;  %691 = vbcast.lane.b32.xlu0 %v661_v1, 288 }
 0x11d   :  { %695 = vbcast.lane.b32.xlu1 %v661_v1, 296  ;;  %v3274_v28 = vpop.xlane.xlu1 %492 }
 0x11e   :  { %4327 = vst [vmem:[#allocation24_spill] sm:$0xff] %v3274_v28  ;;  %v3276_v41 = vpop.xlane.xlu0 %489 }
 0x11f   :  { %4328 = vst [vmem:[#allocation25_spill] sm:$0xff] %v3276_v41  ;;  %699 = vbcast.lane.b32.xlu0 %v661_v1, 304  ;;  %v664_v41 = vsub.s32 1, %v3243_v33 }
 0x121   :  { %703 = vbcast.lane.b32.xlu1 %v661_v1, 312  ;;  %v3278_v52 = vpop.xlane.xlu1 %498 }
 0x122   :  { %4329 = vst [vmem:[#allocation26_spill] sm:$0xff] %v3278_v52  ;;  %v3280_v62 = vpop.xlane.xlu0 %495 }
 0x123   :  { %4330 = vst [vmem:[#allocation27_spill] sm:$0xff] %v3280_v62  ;;  %707 = vbcast.lane.b32.xlu0 %v661_v1, 320  ;;  %v665_v62 = vrot.slane %v3255_v12, %v664_v41 }
 0x125   :  { %711 = vbcast.lane.b32.xlu1 %v661_v1, 328  ;;  %v3282_v49 = vpop.xlane.xlu1 %504 }
 0x126   :  { %4331 = vst [vmem:[#allocation28_spill] sm:$0xff] %v3282_v49  ;;  %v3284_v6 = vpop.xlane.xlu0 %501 }
 0x127   :  { %4332 = vst [vmem:[#allocation29_spill] sm:$0xff] %v3284_v6  ;;  %715 = vbcast.lane.b32.xlu0 %v661_v1, 336 }
 0x129   :  { %719 = vbcast.lane.b32.xlu1 %v661_v1, 344  ;;  %v3286_v21 = vpop.xlane.xlu1 %510 }
 0x12a   :  { %4333 = vst [vmem:[#allocation30_spill] sm:$0xff] %v3286_v21  ;;  %v3288_v14 = vpop.xlane.xlu0 %507 }
 0x12b   :  { %4334 = vst [vmem:[#allocation31_spill] sm:$0xff] %v3288_v14  ;;  %723 = vbcast.lane.b32.xlu0 %v661_v1, 352 }
 0x12d   :  { %727 = vbcast.lane.b32.xlu1 %v661_v1, 360  ;;  %v3291_v28 = vpop.xlane.xlu1 %516 }
 0x12e   :  { %4335 = vst [vmem:[#allocation32_spill] sm:$0xff] %v3291_v28  ;;  %v3293_v52 = vpop.xlane.xlu0 %513 }
 0x12f   :  { %4336 = vst [vmem:[#allocation33_spill] sm:$0xff] %v3293_v52  ;;  %731 = vbcast.lane.b32.xlu0 %v661_v1, 368 }
 0x131   :  { %735 = vbcast.lane.b32.xlu1 %v661_v1, 376  ;;  %v3296_v49 = vpop.xlane.xlu1 %522 }
 0x132   :  { %4337 = vst [vmem:[#allocation34_spill] sm:$0xff] %v3296_v49  ;;  %v3298_v6 = vpop.xlane.xlu0 %519 }
 0x133   :  { %4338 = vst [vmem:[#allocation35_spill] sm:$0xff] %v3298_v6  ;;  %738 = vbcast.lane.b32.xlu0 %v665_v62, 256 }
 0x135   :  { %742 = vbcast.lane.b32.xlu1 %v665_v62, 264  ;;  %v3300_v21 = vpop.xlane.xlu1 %528 }
 0x136   :  { %4339 = vst [vmem:[#allocation36_spill] sm:$0xff] %v3300_v21  ;;  %v3302_v14 = vpop.xlane.xlu0 %525 }
 0x137   :  { %4340 = vst [vmem:[#allocation37_spill] sm:$0xff] %v3302_v14  ;;  %746 = vbcast.lane.b32.xlu0 %v665_v62, 272 }
 0x139   :  { %750 = vbcast.lane.b32.xlu1 %v665_v62, 280  ;;  %v3304_v58 = vpop.xlane.xlu1 %534 }
 0x13a   :  { %4341 = vst [vmem:[#allocation38_spill] sm:$0xff] %v3304_v58  ;;  %v3306_v28 = vpop.xlane.xlu0 %531 }
 0x13b   :  { %4342 = vst [vmem:[#allocation39_spill] sm:$0xff] %v3306_v28  ;;  %754 = vbcast.lane.b32.xlu0 %v665_v62, 288 }
 0x13d   :  { %758 = vbcast.lane.b32.xlu1 %v665_v62, 296  ;;  %v3308_v41 = vpop.xlane.xlu1 %540 }
 0x13e   :  { %4343 = vst [vmem:[#allocation40_spill] sm:$0xff] %v3308_v41  ;;  %v3310_v1 = vpop.xlane.xlu0 %537 }
 0x13f   :  { %4344 = vst [vmem:[#allocation41_spill] sm:$0xff] %v3310_v1  ;;  %762 = vbcast.lane.b32.xlu0 %v665_v62, 304  ;;  %v668_v1 = vsub.s32 2, %v3243_v33 }
 0x141   :  { %766 = vbcast.lane.b32.xlu1 %v665_v62, 312  ;;  %v3312_v6 = vpop.xlane.xlu1 %546 }
 0x142   :  { %4345 = vst [vmem:[#allocation42_spill] sm:$0xff] %v3312_v6  ;;  %v3314_v49 = vpop.xlane.xlu0 %543 }
 0x143   :  { %4346 = vst [vmem:[#allocation43_spill] sm:$0xff] %v3314_v49  ;;  %770 = vbcast.lane.b32.xlu0 %v665_v62, 320  ;;  %v669_v49 = vrot.slane %v3255_v12, %v668_v1 }
 0x145   :  { %774 = vbcast.lane.b32.xlu1 %v665_v62, 328  ;;  %v3316_v14 = vpop.xlane.xlu1 %552 }
 0x146   :  { %4347 = vst [vmem:[#allocation44_spill] sm:$0xff] %v3316_v14  ;;  %v3318_v21 = vpop.xlane.xlu0 %549 }
 0x147   :  { %4348 = vst [vmem:[#allocation45_spill] sm:$0xff] %v3318_v21  ;;  %778 = vbcast.lane.b32.xlu0 %v665_v62, 336 }
 0x149   :  { %782 = vbcast.lane.b32.xlu1 %v665_v62, 344  ;;  %v3320_v28 = vpop.xlane.xlu1 %558 }
 0x14a   :  { %4349 = vst [vmem:[#allocation46_spill] sm:$0xff] %v3320_v28  ;;  %v3322_v58 = vpop.xlane.xlu0 %555 }
 0x14b   :  { %4350 = vst [vmem:[#allocation47_spill] sm:$0xff] %v3322_v58  ;;  %786 = vbcast.lane.b32.xlu0 %v665_v62, 352 }
 0x14d   :  { %790 = vbcast.lane.b32.xlu1 %v665_v62, 360  ;;  %v3325_v41 = vpop.xlane.xlu1 %564 }
 0x14e   :  { %4351 = vst [vmem:[#allocation48_spill] sm:$0xff] %v3325_v41  ;;  %v3327_v6 = vpop.xlane.xlu0 %561 }
 0x14f   :  { %794 = vbcast.lane.b32.xlu0 %v665_v62, 368 }
 0x151   :  { %798 = vbcast.lane.b32.xlu1 %v665_v62, 376  ;;  %v3330_v14 = vpop.xlane.xlu1 %570 }
 0x152   :  { %4352 = vst [vmem:[#allocation49_spill] sm:$0xff] %v3330_v14  ;;  %v3332_v21 = vpop.xlane.xlu0 %567 }
 0x153   :  { %4353 = vst [vmem:[#allocation50_spill] sm:$0xff] %v3332_v21  ;;  %801 = vbcast.lane.b32.xlu0 %v669_v49, 256 }
 0x155   :  { %805 = vbcast.lane.b32.xlu1 %v669_v49, 264  ;;  %v3334_v28 = vpop.xlane.xlu1 %576 }
 0x156   :  { %4354 = vst [vmem:[#allocation51_spill] sm:$0xff] %v3334_v28  ;;  %v3336_v58 = vpop.xlane.xlu0 %573 }
 0x157   :  { %4355 = vst [vmem:[#allocation52_spill] sm:$0xff] %v3336_v58  ;;  %809 = vbcast.lane.b32.xlu0 %v669_v49, 272 }
 0x159   :  { %813 = vbcast.lane.b32.xlu1 %v669_v49, 280  ;;  %v3338_v52 = vpop.xlane.xlu1 %582 }
 0x15a   :  { %4356 = vst [vmem:[#allocation53_spill] sm:$0xff] %v3338_v52  ;;  %v3340_v41 = vpop.xlane.xlu0 %579 }
 0x15b   :  { %4357 = vst [vmem:[#allocation54_spill] sm:$0xff] %v3340_v41  ;;  %817 = vbcast.lane.b32.xlu0 %v669_v49, 288 }
 0x15d   :  { %821 = vbcast.lane.b32.xlu1 %v669_v49, 296  ;;  %v3342_v1 = vpop.xlane.xlu1 %588 }
 0x15e   :  { %4358 = vst [vmem:[#allocation55_spill] sm:$0xff] %v3342_v1  ;;  %v3344_v62 = vpop.xlane.xlu0 %585  ;;  %v672_v1 = vsub.s32 3, %v3243_v33 }
 0x15f   :  { %4359 = vst [vmem:[#allocation56_spill] sm:$0xff] %v3344_v62  ;;  %825 = vbcast.lane.b32.xlu0 %v669_v49, 304 }
 0x161   :  { %829 = vbcast.lane.b32.xlu1 %v669_v49, 312  ;;  %v3346_v14 = vpop.xlane.xlu1 %594 }
 0x162   :  { %4360 = vst [vmem:[#allocation57_spill] sm:$0xff] %v3346_v14  ;;  %v3348_v21 = vpop.xlane.xlu0 %591 }
 0x163   :  { %4361 = vst [vmem:[#allocation58_spill] sm:$0xff] %v3348_v21  ;;  %833 = vbcast.lane.b32.xlu0 %v669_v49, 320  ;;  %v673_v21 = vrot.slane %v3255_v12, %v672_v1 }
 0x165   :  { %837 = vbcast.lane.b32.xlu1 %v669_v49, 328  ;;  %v3350_v28 = vpop.xlane.xlu1 %600 }
 0x166   :  { %4362 = vst [vmem:[#allocation59_spill] sm:$0xff] %v3350_v28  ;;  %v3352_v58 = vpop.xlane.xlu0 %597 }
 0x167   :  { %4363 = vst [vmem:[#allocation60_spill] sm:$0xff] %v3352_v58  ;;  %841 = vbcast.lane.b32.xlu0 %v669_v49, 336 }
 0x169   :  { %845 = vbcast.lane.b32.xlu1 %v669_v49, 344  ;;  %v3354_v52 = vpop.xlane.xlu1 %606 }
 0x16a   :  { %4364 = vst [vmem:[#allocation61_spill] sm:$0xff] %v3354_v52  ;;  %v3356_v41 = vpop.xlane.xlu0 %603 }
 0x16b   :  { %4365 = vst [vmem:[#allocation62_spill] sm:$0xff] %v3356_v41  ;;  %849 = vbcast.lane.b32.xlu0 %v669_v49, 352 }
 0x16d   :  { %853 = vbcast.lane.b32.xlu1 %v669_v49, 360  ;;  %v3359_v62 = vpop.xlane.xlu1 %612 }
 0x16e   :  { %4366 = vst [vmem:[#allocation63_spill] sm:$0xff] %v3359_v62  ;;  %v3361_v14 = vpop.xlane.xlu0 %609 }
 0x16f   :  { %4367 = vst [vmem:[#allocation64_spill] sm:$0xff] %v3361_v14  ;;  %857 = vbcast.lane.b32.xlu0 %v669_v49, 368 }
 0x171   :  { %861 = vbcast.lane.b32.xlu1 %v669_v49, 376  ;;  %v3364_v28 = vpop.xlane.xlu1 %618 }
 0x172   :  { %4368 = vst [vmem:[#allocation65_spill] sm:$0xff] %v3364_v28  ;;  %v3366_v58 = vpop.xlane.xlu0 %615 }
 0x173   :  { %4369 = vst [vmem:[#allocation66_spill] sm:$0xff] %v3366_v58  ;;  %864 = vbcast.lane.b32.xlu0 %v673_v21, 256 }
 0x175   :  { %868 = vbcast.lane.b32.xlu1 %v673_v21, 264  ;;  %v3368_v52 = vpop.xlane.xlu1 %624 }
 0x176   :  { %4370 = vst [vmem:[#allocation67_spill] sm:$0xff] %v3368_v52  ;;  %v3370_v41 = vpop.xlane.xlu0 %621 }
 0x177   :  { %4371 = vst [vmem:[#allocation68_spill] sm:$0xff] %v3370_v41  ;;  %872 = vbcast.lane.b32.xlu0 %v673_v21, 272 }
 0x179   :  { %876 = vbcast.lane.b32.xlu1 %v673_v21, 280  ;;  %v3372_v33 = vpop.xlane.xlu1 %630 }
 0x17a   :  { %4372 = vst [vmem:[#allocation69_spill] sm:$0xff] %v3372_v33  ;;  %v3374_v62 = vpop.xlane.xlu0 %627 }
 0x17b   :  { %4373 = vst [vmem:[#allocation70_spill] sm:$0xff] %v3374_v62  ;;  %880 = vbcast.lane.b32.xlu0 %v673_v21, 288 }
 0x17d   :  { %884 = vbcast.lane.b32.xlu1 %v673_v21, 296  ;;  %v3376_v12 = vpop.xlane.xlu1 %636 }
 0x17e   :  { %4374 = vst [vmem:[#allocation71_spill] sm:$0xff] %v3376_v12  ;;  %v3378_v49 = vpop.xlane.xlu0 %633 }
 0x17f   :  { %4375 = vst [vmem:[#allocation72_spill] sm:$0xff] %v3378_v49  ;;  %888 = vbcast.lane.b32.xlu0 %v673_v21, 304 }
 0x181   :  { %892 = vbcast.lane.b32.xlu1 %v673_v21, 312  ;;  %v3380_v1 = vpop.xlane.xlu1 %642 }
 0x182   :  { %4376 = vst [vmem:[#allocation73_spill] sm:$0xff] %v3380_v1  ;;  %v3382_v28 = vpop.xlane.xlu0 %639 }
 0x183   :  { %4377 = vst [vmem:[#allocation74_spill] sm:$0xff] %v3382_v28  ;;  %896 = vbcast.lane.b32.xlu0 %v673_v21, 320 }
 0x185   :  { %900 = vbcast.lane.b32.xlu1 %v673_v21, 328  ;;  %v3384_v52 = vpop.xlane.xlu1 %648 }
 0x186   :  { %4378 = vst [vmem:[#allocation75_spill] sm:$0xff] %v3384_v52  ;;  %v3386_v41 = vpop.xlane.xlu0 %645 }
 0x187   :  { %4379 = vst [vmem:[#allocation76_spill] sm:$0xff] %v3386_v41  ;;  %904 = vbcast.lane.b32.xlu0 %v673_v21, 336 }
 0x189   :  { %908 = vbcast.lane.b32.xlu1 %v673_v21, 344  ;;  %v3388_v33 = vpop.xlane.xlu1 %654 }
 0x18a   :  { %4380 = vst [vmem:[#allocation77_spill] sm:$0xff] %v3388_v33  ;;  %v3390_v62 = vpop.xlane.xlu0 %651 }
 0x18b   :  { %4381 = vst [vmem:[#allocation78_spill] sm:$0xff] %v3390_v62  ;;  %912 = vbcast.lane.b32.xlu0 %v673_v21, 352 }
 0x18d   :  { %916 = vbcast.lane.b32.xlu1 %v673_v21, 360  ;;  %v3392_v12 = vpop.permute.xlu1 %679 }
 0x18e   :  { %v3394_v49 = vpop.permute.xlu0 %675  ;;  %v991_v33 = vmul.f32 %v3392_v12, %v2808_v35 }
 0x18f   :  { %920 = vbcast.lane.b32.xlu0 %v673_v21, 368  ;;  %v990_v1 = vmul.f32 %v3394_v49, %v2792_v27 }
 0x191   :  { %924 = vbcast.lane.b32.xlu1 %v673_v21, 376  ;;  %v3398_v52 = vpop.permute.xlu1 %683 }
 0x192   :  { %v3400_v41 = vpop.permute.xlu0 %691  ;;  %v992_v27 = vmul.f32 %v3398_v52, %v2784_v23 }
 0x193   :  { %1247 = vperm.xlu0 %2329, %v990_v1  }
 0x195   :  { %v3404_v62 = vpop.permute.xlu1 %687  ;;  %1250 = vperm.xlu1 %2330, %v991_v33   ;;  %v994_v33 = vmul.f32 %v3400_v41, %v2824_v43 }
 0x196   :  { %v993_v28 = vmul.f32 %v3404_v62, %v2800_v31  ;;  %v3408_v58 = vpop.permute.xlu0 %699 }
 0x198   :  { %1256 = vperm.xlu0 %2329, %v993_v28   ;;  %v996_v28 = vmul.f32 %v3408_v58, %v2840_v51 }
 0x199   :  { %v3412_v21 = vpop.permute.xlu1 %695  ;;  %1253 = vperm.xlu1 %2330, %v992_v27  }
 0x19a   :  { %v995_v14 = vmul.f32 %v3412_v21, %v2816_v39  ;;  %v3416_v35 = vpop.permute.xlu0 %707 }
 0x19c   :  { %1262 = vperm.xlu0 %2329, %v995_v14   ;;  %v998_v14 = vmul.f32 %v3416_v35, %v2856_v59 }
 0x19d   :  { %v3420_v1 = vpop.permute.xlu1 %703  ;;  %1259 = vperm.xlu1 %2330, %v994_v33  }
 0x19e   :  { %v997_v31 = vmul.f32 %v3420_v1, %v2832_v47  ;;  %v3424_v23 = vpop.permute.xlu0 %715 }
 0x1a0   :  { %1268 = vperm.xlu0 %2329, %v997_v31   ;;  %v1000_v31 = vmul.f32 %v3424_v23, %v2872_v3 }
 0x1a1   :  { %v3428_v27 = vpop.permute.xlu1 %711  ;;  %1265 = vperm.xlu1 %2330, %v996_v28  }
 0x1a2   :  { %v999_v39 = vmul.f32 %v3428_v27, %v2848_v55  ;;  %v3432_v43 = vpop.permute.xlu0 %723 }
 0x1a4   :  { %1274 = vperm.xlu0 %2329, %v999_v39   ;;  %v1002_v39 = vmul.f32 %v3432_v43, %v2888_v11 }
 0x1a5   :  { %v3436_v33 = vpop.permute.xlu1 %719  ;;  %1271 = vperm.xlu1 %2330, %v998_v14  }
 0x1a6   :  { %v1001_v47 = vmul.f32 %v3436_v33, %v2864_v63  ;;  %v3440_v51 = vpop.permute.xlu0 %731 }
 0x1a8   :  { %1280 = vperm.xlu0 %2329, %v1001_v47   ;;  %v1004_v47 = vmul.f32 %v3440_v51, %v2904_v19 }
 0x1a9   :  { %v3444_v28 = vpop.permute.xlu1 %727  ;;  %1277 = vperm.xlu1 %2330, %v1000_v31  }
 0x1aa   :  { %v1003_v55 = vmul.f32 %v3444_v28, %v2880_v7  ;;  %v3448_v59 = vpop.permute.xlu0 %738 }
 0x1ac   :  { %1286 = vperm.xlu0 %2329, %v1003_v55   ;;  %v1006_v55 = vmul.f32 %v3448_v59, %v2920_v29 }
 0x1ad   :  { %v3452_v14 = vpop.permute.xlu1 %735  ;;  %1283 = vperm.xlu1 %2330, %v1002_v39  }
 0x1ae   :  { %v1005_v63 = vmul.f32 %v3452_v14, %v2896_v15  ;;  %v3456_v3 = vpop.permute.xlu0 %746 }
 0x1b0   :  { %1292 = vperm.xlu0 %2329, %v1005_v63   ;;  %v1008_v63 = vmul.f32 %v3456_v3, %v2936_v40 }
 0x1b1   :  { %v3460_v31 = vpop.permute.xlu1 %742  ;;  %1289 = vperm.xlu1 %2330, %v1004_v47  }
 0x1b2   :  { %v1007_v7 = vmul.f32 %v3460_v31, %v2912_v24  ;;  %v3464_v11 = vpop.permute.xlu0 %754 }
 0x1b4   :  { %1298 = vperm.xlu0 %2329, %v1007_v7   ;;  %v1010_v7 = vmul.f32 %v3464_v11, %v2952_v50 }
 0x1b5   :  { %v3468_v39 = vpop.permute.xlu1 %750  ;;  %1295 = vperm.xlu1 %2330, %v1006_v55  }
 0x1b6   :  { %v1009_v15 = vmul.f32 %v3468_v39, %v2928_v34  ;;  %v3472_v19 = vpop.permute.xlu0 %762 }
 0x1b8   :  { %1304 = vperm.xlu0 %2329, %v1009_v15   ;;  %v1012_v15 = vmul.f32 %v3472_v19, %v2968_v61 }
 0x1b9   :  { %v3476_v47 = vpop.permute.xlu1 %758  ;;  %1301 = vperm.xlu1 %2330, %v1008_v63  }
 0x1ba   :  { %v1011_v24 = vmul.f32 %v3476_v47, %v2944_v45  ;;  %v3480_v29 = vpop.permute.xlu0 %770 }
 0x1bc   :  { %1310 = vperm.xlu0 %2329, %v1011_v24   ;;  %v1014_v24 = vmul.f32 %v3480_v29, %v2984_v8 }
 0x1bd   :  { %v3484_v55 = vpop.permute.xlu1 %766  ;;  %1307 = vperm.xlu1 %2330, %v1010_v7  }
 0x1be   :  { %v1013_v34 = vmul.f32 %v3484_v55, %v2960_v56  ;;  %v3488_v40 = vpop.permute.xlu0 %778 }
 0x1c0   :  { %1316 = vperm.xlu0 %2329, %v1013_v34   ;;  %v1016_v34 = vmul.f32 %v3488_v40, %v3000_v18 }
 0x1c1   :  { %v3492_v63 = vpop.permute.xlu1 %774  ;;  %1313 = vperm.xlu1 %2330, %v1012_v15  }
 0x1c2   :  { %v1015_v45 = vmul.f32 %v3492_v63, %v2976_v2  ;;  %v3496_v50 = vpop.permute.xlu0 %786 }
 0x1c4   :  { %1322 = vperm.xlu0 %2329, %v1015_v45   ;;  %v1018_v45 = vmul.f32 %v3496_v50, %v3016_v32 }
 0x1c5   :  { %v3500_v7 = vpop.permute.xlu1 %782  ;;  %1319 = vperm.xlu1 %2330, %v1014_v24  }
 0x1c6   :  { %v1017_v56 = vmul.f32 %v3500_v7, %v2992_v13  ;;  %v3504_v61 = vpop.permute.xlu0 %794 }
 0x1c7   :  { %4382 = vst [vmem:[#allocation79_spill] sm:$0xff] %v3504_v61 }
 0x1c8   :  { %1328 = vperm.xlu0 %2329, %v1017_v56   ;;  %v1020_v56 = vmul.f32 %v3504_v61, %v3032_v46 }
 0x1c9   :  { %v3508_v15 = vpop.permute.xlu1 %790  ;;  %1325 = vperm.xlu1 %2330, %v1016_v34  }
 0x1ca   :  { %v1019_v2 = vmul.f32 %v3508_v15, %v3008_v25  ;;  %v3512_v8 = vpop.permute.xlu0 %801 }
 0x1cc   :  { %1334 = vperm.xlu0 %2329, %v1019_v2   ;;  %v1022_v2 = vmul.f32 %v3512_v8, %v3048_v60 }
 0x1cd   :  { %v3516_v24 = vpop.permute.xlu1 %798  ;;  %1331 = vperm.xlu1 %2330, %v1018_v45  }
 0x1ce   :  { %4383 = vst [vmem:[#allocation80_spill] sm:$0xff] %v3516_v24  ;;  %v1021_v13 = vmul.f32 %v3516_v24, %v3024_v38  ;;  %v3520_v18 = vpop.permute.xlu0 %809 }
 0x1d0   :  { %1340 = vperm.xlu0 %2329, %v1021_v13   ;;  %v1024_v13 = vmul.f32 %v3520_v18, %v3064_v10 }
 0x1d1   :  { %v3524_v34 = vpop.permute.xlu1 %805  ;;  %1337 = vperm.xlu1 %2330, %v1020_v56  }
 0x1d2   :  { %v1023_v25 = vmul.f32 %v3524_v34, %v3040_v53  ;;  %v3528_v32 = vpop.permute.xlu0 %817 }
 0x1d4   :  { %1346 = vperm.xlu0 %2329, %v1023_v25   ;;  %v1026_v25 = vmul.f32 %v3528_v32, %v3080_v26 }
 0x1d5   :  { %v3532_v45 = vpop.permute.xlu1 %813  ;;  %1343 = vperm.xlu1 %2330, %v1022_v2  }
 0x1d6   :  { %v1025_v38 = vmul.f32 %v3532_v45, %v3056_v4  ;;  %v3536_v46 = vpop.permute.xlu0 %825 }
 0x1d8   :  { %1352 = vperm.xlu0 %2329, %v1025_v38   ;;  %v1028_v38 = vmul.f32 %v3536_v46, %v3096_v44 }
 0x1d9   :  { %v3540_v56 = vpop.permute.xlu1 %821  ;;  %1349 = vperm.xlu1 %2330, %v1024_v13  }
 0x1da   :  { %v1027_v53 = vmul.f32 %v3540_v56, %v3072_v17  ;;  %v3544_v60 = vpop.permute.xlu0 %833 }
 0x1dc   :  { %1358 = vperm.xlu0 %2329, %v1027_v53   ;;  %v1030_v53 = vmul.f32 %v3544_v60, %v3112_v0 }
 0x1dd   :  { %v3548_v2 = vpop.permute.xlu1 %829  ;;  %1355 = vperm.xlu1 %2330, %v1026_v25  }
 0x1de   :  { %v1029_v4 = vmul.f32 %v3548_v2, %v3088_v36  ;;  %v3552_v10 = vpop.permute.xlu0 %841 }
 0x1e0   :  { %1364 = vperm.xlu0 %2329, %v1029_v4   ;;  %v1032_v4 = vmul.f32 %v3552_v10, %v3128_v20 }
 0x1e1   :  { %v3556_v13 = vpop.permute.xlu1 %837  ;;  %1361 = vperm.xlu1 %2330, %v1028_v38  }
 0x1e2   :  { %v1031_v17 = vmul.f32 %v3556_v13, %v3104_v54  ;;  %v3560_v26 = vpop.permute.xlu0 %849 }
 0x1e3   :  { %4384 = vst [vmem:[#allocation81_spill] sm:$0xff] %v3560_v26 }
 0x1e4   :  { %1370 = vperm.xlu0 %2329, %v1031_v17   ;;  %v1034_v17 = vmul.f32 %v3560_v26, %v3144_v42 }
 0x1e5   :  { %v3564_v25 = vpop.permute.xlu1 %845  ;;  %1367 = vperm.xlu1 %2330, %v1030_v53  }
 0x1e6   :  { %4385 = vst [vmem:[#allocation82_spill] sm:$0xff] %v3564_v25  ;;  %v1033_v36 = vmul.f32 %v3564_v25, %v3120_v9  ;;  %v3568_v44 = vpop.permute.xlu0 %857 }
 0x1e7   :  { %4386 = vst [vmem:[#allocation83_spill] sm:$0xff] %v3568_v44 }
 0x1e8   :  { %1376 = vperm.xlu0 %2329, %v1033_v36   ;;  %v1036_v36 = vmul.f32 %v3568_v44, %v3160_v5 }
 0x1e9   :  { %v3572_v38 = vpop.permute.xlu1 %853  ;;  %1373 = vperm.xlu1 %2330, %v1032_v4  }
 0x1ea   :  { %4387 = vst [vmem:[#allocation84_spill] sm:$0xff] %v3572_v38  ;;  %v1035_v54 = vmul.f32 %v3572_v38, %v3136_v30  ;;  %v3576_v0 = vpop.permute.xlu0 %864 }
 0x1ec   :  { %1382 = vperm.xlu0 %2329, %v1035_v54   ;;  %v4389_v54 = vld [vmem:[#allocation3_spill] sm:$0xff] }
 0x1ed   :  { %v3580_v53 = vpop.permute.xlu1 %861  ;;  %1379 = vperm.xlu1 %2330, %v1034_v17   ;;  %v1038_v17 = vmul.f32 %v3576_v0, %v4389_v54 }
 0x1ee   :  { %4388 = vst [vmem:[#allocation85_spill] sm:$0xff] %v3580_v53  ;;  %v1037_v9 = vmul.f32 %v3580_v53, %v3152_v57  ;;  %v3584_v20 = vpop.permute.xlu0 %872  ;;  %v4390_v57 = vld [vmem:[#allocation4_spill] sm:$0xff] }
 0x1f0   :  { %1388 = vperm.xlu0 %2329, %v1037_v9   ;;  %v4391_v9 = vld [vmem:[#allocation5_spill] sm:$0xff] }
 0x1f1   :  { %v3588_v4 = vpop.permute.xlu1 %868  ;;  %1385 = vperm.xlu1 %2330, %v1036_v36   ;;  %v1040_v36 = vmul.f32 %v3584_v20, %v4391_v9  ;;  %v4396_v9 = vld [vmem:[#allocation9_spill] sm:$0xff] }
 0x1f2   :  { %v1039_v30 = vmul.f32 %v3588_v4, %v3168_v16  ;;  %v3592_v42 = vpop.permute.xlu0 %880  ;;  %v4392_v16 = vld [vmem:[#allocation6_spill] sm:$0xff] }
 0x1f4   :  { %1394 = vperm.xlu0 %2329, %v1039_v30   ;;  %v4394_v30 = vld [vmem:[#allocation7_spill] sm:$0xff] }
 0x1f5   :  { %v3596_v38 = vpop.permute.xlu1 %876  ;;  %1391 = vperm.xlu1 %2330, %v1038_v17   ;;  %v1042_v17 = vmul.f32 %v3592_v42, %v4394_v30 }
 0x1f6   :  { %v1041_v53 = vmul.f32 %v3596_v38, %v4390_v57  ;;  %v3600_v5 = vpop.permute.xlu0 %888  ;;  %v4395_v57 = vld [vmem:[#allocation8_spill] sm:$0xff] }
 0x1f8   :  { %1400 = vperm.xlu0 %2329, %v1041_v53   ;;  %v1044_v53 = vmul.f32 %v3600_v5, %v4396_v9  ;;  %v4401_v9 = vld [vmem:[#allocation10_spill] sm:$0xff] }
 0x1f9   :  { %v3604_v44 = vpop.permute.xlu1 %884  ;;  %1397 = vperm.xlu1 %2330, %v1040_v36  }
 0x1fa   :  { %v1043_v24 = vmul.f32 %v3604_v44, %v4392_v16  ;;  %v3608_v54 = vpop.permute.xlu0 %896 }
 0x1fb   :  { %4393 = vst [vmem:[#allocation3_spill] sm:$0xff] %v3608_v54 }
 0x1fc   :  { %1406 = vperm.xlu0 %2329, %v1043_v24   ;;  %v1046_v24 = vmul.f32 %v3608_v54, %v3234_v37  ;;  %v4404_v37 = vld [vmem:[#allocation13_spill] sm:$0xff] }
 0x1fd   :  { %v3612_v61 = vpop.permute.xlu1 %892  ;;  %1403 = vperm.xlu1 %2330, %v1042_v17  }
 0x1fe   :  { %v1045_v26 = vmul.f32 %v3612_v61, %v4395_v57  ;;  %v3618_v25 = vpop.permute.xlu0 %904 }
 0x1ff   :  { %4397 = vst [vmem:[#allocation4_spill] sm:$0xff] %v3618_v25 }
 0x200   :  { %1412 = vperm.xlu0 %2329, %v1045_v26   ;;  %v1048_v26 = vmul.f32 %v3618_v25, %v4401_v9  ;;  %v4406_v9 = vld [vmem:[#allocation15_spill] sm:$0xff] }
 0x201   :  { %v3620_v36 = vpop.permute.xlu1 %900  ;;  %1409 = vperm.xlu1 %2330, %v1044_v53  }
 0x202   :  { %4398 = vst [vmem:[#allocation5_spill] sm:$0xff] %v3620_v36  ;;  %v1047_v16 = vmul.f32 %v3620_v36, %v3232_v22  ;;  %v3626_v30 = vpop.permute.xlu0 %912  ;;  %v4403_v22 = vld [vmem:[#allocation11_spill] sm:$0xff] }
 0x203   :  { %4399 = vst [vmem:[#allocation6_spill] sm:$0xff] %v3626_v30 }
 0x204   :  { %1418 = vperm.xlu0 %2329, %v1047_v16   ;;  %v1050_v16 = vmul.f32 %v3626_v30, %v4404_v37 }
 0x205   :  { %v3628_v17 = vpop.permute.xlu1 %908  ;;  %1415 = vperm.xlu1 %2330, %v1046_v24  }
 0x206   :  { %4400 = vst [vmem:[#allocation7_spill] sm:$0xff] %v3628_v17  ;;  %v1049_v57 = vmul.f32 %v3628_v17, %v3236_v48  ;;  %v3640_v54 = vpop.permute.xlu0 %920  ;;  %v4405_v48 = vld [vmem:[#allocation14_spill] sm:$0xff] }
 0x208   :  { %1424 = vperm.xlu0 %2329, %v1049_v57   ;;  %v1052_v57 = vmul.f32 %v3640_v54, %v4406_v9 }
 0x209   :  { %v3634_v53 = vpop.permute.xlu1 %916  ;;  %1421 = vperm.xlu1 %2330, %v1048_v26  }
 0x20a   :  { %4402 = vst [vmem:[#allocation8_spill] sm:$0xff] %v3634_v53  ;;  %v1051_v36 = vmul.f32 %v3634_v53, %v4403_v22  ;;  %v4409_v22 = vld [vmem:[#allocation16_spill] sm:$0xff]  ;;  %v4410_v53 = vld [vmem:[#allocation17_spill] sm:$0xff] }
 0x20b   :  { %v1055_v37 = vmul.f32 %v3392_v12, %v4409_v22  ;;  %v4413_v12 = vld [vmem:[#allocation20_spill] sm:$0xff] }
 0x20c   :  { %1430 = vperm.xlu0 %2329, %v1051_v36   ;;  %v1054_v36 = vmul.f32 %v3394_v49, %v4410_v53  ;;  %v1059_v49 = vmul.f32 %v3412_v21, %v4413_v12  ;;  %v4414_v53 = vld [vmem:[#allocation21_spill] sm:$0xff]  ;;  %v4417_v21 = vld [vmem:[#allocation24_spill] sm:$0xff] }
 0x20d   :  { %v3642_v24 = vpop.permute.xlu1 %924  ;;  %1427 = vperm.xlu1 %2330, %v1050_v16   ;;  %v1058_v22 = vmul.f32 %v3400_v41, %v4414_v53  ;;  %v1063_v41 = vmul.f32 %v3428_v27, %v4417_v21  ;;  %v4418_v12 = vld [vmem:[#allocation25_spill] sm:$0xff]  ;;  %v4422_v27 = vld [vmem:[#allocation28_spill] sm:$0xff] }
 0x20e   :  { %v1053_v17 = vmul.f32 %v3642_v24, %v4405_v48  ;;  %v3648_v25 = vpop.permute.xlu0 %1247  ;;  %v4411_v48 = vld [vmem:[#allocation18_spill] sm:$0xff]  ;;  %v4423_v21 = vld [vmem:[#allocation29_spill] sm:$0xff] }
 0x20f   :  { %4407 = vst [vmem:[#allocation9_spill] sm:$0xff] %v3648_v25  ;;  %v1057_v9 = vmul.f32 %v3404_v62, %v4411_v48  ;;  %v4412_v25 = vld [vmem:[#allocation19_spill] sm:$0xff]  ;;  %v4415_v62 = vld [vmem:[#allocation22_spill] sm:$0xff] }
 0x210   :  { %1436 = vperm.xlu0 %2329, %v1053_v17   ;;  %v1056_v17 = vmul.f32 %v3398_v52, %v4412_v25  ;;  %v1061_v52 = vmul.f32 %v3420_v1, %v4415_v62  ;;  %v4416_v25 = vld [vmem:[#allocation23_spill] sm:$0xff]  ;;  %v4419_v1 = vld [vmem:[#allocation26_spill] sm:$0xff] }
 0x211   :  { %v3650_v26 = vpop.permute.xlu1 %1250  ;;  %1433 = vperm.xlu1 %2330, %v1052_v57   ;;  %v1060_v48 = vmul.f32 %v3408_v58, %v4416_v25  ;;  %v1065_v58 = vmul.f32 %v3436_v33, %v4419_v1  ;;  %v4420_v62 = vld [vmem:[#allocation27_spill] sm:$0xff]  ;;  %v4425_v33 = vld [vmem:[#allocation30_spill] sm:$0xff] }
 0x212   :  { %4408 = vst [vmem:[#allocation10_spill] sm:$0xff] %v3650_v26  ;;  %v4426_v1 = vld [vmem:[#allocation31_spill] sm:$0xff] }
 0x213   :  { %v3656_v30 = vpop.permute.xlu0 %1256 }
 0x214   :  { %1442 = vperm.xlu0 %2329, %v1055_v37  }
 0x215   :  { %v3658_v16 = vpop.permute.xlu1 %1253  ;;  %1439 = vperm.xlu1 %2330, %v1054_v36  }
 0x217   :  { %v3664_v26 = vpop.permute.xlu0 %1262 }
 0x218   :  { %1448 = vperm.xlu0 %2329, %v1057_v9  }
 0x219   :  { %v3666_v57 = vpop.permute.xlu1 %1259  ;;  %1445 = vperm.xlu1 %2330, %v1056_v17  }
 0x21b   :  { %v3672_v37 = vpop.permute.xlu0 %1268 }
 0x21c   :  { %1454 = vperm.xlu0 %2329, %v1059_v49   ;;  %v1062_v49 = vmul.f32 %v3416_v35, %v4418_v12  ;;  %v1067_v35 = vmul.f32 %v3444_v28, %v4422_v27  ;;  %v4427_v28 = vld [vmem:[#allocation32_spill] sm:$0xff]  ;;  %v4428_v27 = vld [vmem:[#allocation33_spill] sm:$0xff] }
 0x21d   :  { %v3674_v36 = vpop.permute.xlu1 %1265  ;;  %1451 = vperm.xlu1 %2330, %v1058_v22  }
 0x21f   :  { %v3680_v9 = vpop.permute.xlu0 %1274 }
 0x220   :  { %1460 = vperm.xlu0 %2329, %v1061_v52   ;;  %v1064_v52 = vmul.f32 %v3424_v23, %v4420_v62  ;;  %v1069_v23 = vmul.f32 %v3452_v14, %v4425_v33  ;;  %v4429_v14 = vld [vmem:[#allocation34_spill] sm:$0xff]  ;;  %v4430_v33 = vld [vmem:[#allocation35_spill] sm:$0xff] }
 0x221   :  { %v3682_v17 = vpop.permute.xlu1 %1271  ;;  %1457 = vperm.xlu1 %2330, %v1060_v48  }
 0x223   :  { %v3688_v53 = vpop.permute.xlu0 %1280 }
 0x224   :  { %1466 = vperm.xlu0 %2329, %v1063_v41   ;;  %v1066_v41 = vmul.f32 %v3432_v43, %v4423_v21  ;;  %v1071_v43 = vmul.f32 %v3460_v31, %v4427_v28  ;;  %v4431_v31 = vld [vmem:[#allocation36_spill] sm:$0xff]  ;;  %v4432_v28 = vld [vmem:[#allocation37_spill] sm:$0xff] }
 0x225   :  { %v3690_v22 = vpop.permute.xlu1 %1277  ;;  %1463 = vperm.xlu1 %2330, %v1062_v49  }
 0x227   :  { %v3696_v25 = vpop.permute.xlu0 %1286 }
 0x228   :  { %4421 = vst [vmem:[#allocation11_spill] sm:$0xff] %v3696_v25  ;;  %1472 = vperm.xlu0 %2329, %v1065_v58   ;;  %v1068_v58 = vmul.f32 %v3440_v51, %v4426_v1  ;;  %v1073_v51 = vmul.f32 %v3468_v39, %v4429_v14  ;;  %v4433_v39 = vld [vmem:[#allocation38_spill] sm:$0xff]  ;;  %v4434_v14 = vld [vmem:[#allocation39_spill] sm:$0xff] }
 0x229   :  { %v3698_v48 = vpop.permute.xlu1 %1283  ;;  %1469 = vperm.xlu1 %2330, %v1064_v52  }
 0x22b   :  { %v3704_v12 = vpop.permute.xlu0 %1292 }
 0x22c   :  { %4424 = vst [vmem:[#allocation13_spill] sm:$0xff] %v3704_v12  ;;  %1478 = vperm.xlu0 %2329, %v1067_v35   ;;  %v1070_v35 = vmul.f32 %v3448_v59, %v4428_v27  ;;  %v1075_v59 = vmul.f32 %v3476_v47, %v4431_v31  ;;  %v4435_v47 = vld [vmem:[#allocation40_spill] sm:$0xff]  ;;  %v4436_v31 = vld [vmem:[#allocation41_spill] sm:$0xff] }
 0x22d   :  { %v3706_v49 = vpop.permute.xlu1 %1289  ;;  %1475 = vperm.xlu1 %2330, %v1066_v41  }
 0x22f   :  { %v3712_v62 = vpop.permute.xlu0 %1298 }
 0x230   :  { %1484 = vperm.xlu0 %2329, %v1069_v23   ;;  %v1072_v23 = vmul.f32 %v3456_v3, %v4430_v33  ;;  %v1077_v3 = vmul.f32 %v3484_v55, %v4433_v39  ;;  %v4438_v55 = vld [vmem:[#allocation42_spill] sm:$0xff]  ;;  %v4439_v39 = vld [vmem:[#allocation43_spill] sm:$0xff] }
 0x231   :  { %v3714_v52 = vpop.permute.xlu1 %1295  ;;  %1481 = vperm.xlu1 %2330, %v1068_v58  }
 0x233   :  { %v3720_v21 = vpop.permute.xlu0 %1304 }
 0x234   :  { %1490 = vperm.xlu0 %2329, %v1071_v43   ;;  %v1074_v43 = vmul.f32 %v3464_v11, %v4432_v28  ;;  %v1079_v11 = vmul.f32 %v3492_v63, %v4435_v47  ;;  %v4441_v63 = vlaneseq }
 0x235   :  { %v3722_v41 = vpop.permute.xlu1 %1301  ;;  %1487 = vperm.xlu1 %2330, %v1070_v35  }
 0x236   :  { %v3767_v47 = vand.u32 127, %v4441_v63 }
 0x237   :  { %v3728_v1 = vpop.permute.xlu0 %1310 }
 0x238   :  { %1496 = vperm.xlu0 %2329, %v1073_v51   ;;  %v1076_v51 = vmul.f32 %v3472_v19, %v4434_v14  ;;  %v1081_v19 = vmul.f32 %v3500_v7, %v4438_v55  ;;  %v1636_v7 = vadd.s32 4294967288, %v3767_v47  ;;  %v4445_v55 = vld [vmem:[#allocation50_spill] sm:$0xff] }
 0x239   :  { %v3730_v58 = vpop.permute.xlu1 %1307  ;;  %1493 = vperm.xlu1 %2330, %v1072_v23  }
 0x23b   :  { %v3736_v27 = vpop.permute.xlu0 %1316 }
 0x23c   :  { %1502 = vperm.xlu0 %2329, %v1075_v59   ;;  %v1078_v59 = vmul.f32 %v3480_v29, %v4436_v31  ;;  %v1086_v29 = vmul.f32 %v3512_v8, %v3327_v6 }
 0x23d   :  { %v3738_v35 = vpop.permute.xlu1 %1313  ;;  %1499 = vperm.xlu1 %2330, %v1074_v43  }
 0x23f   :  { %v3744_v33 = vpop.permute.xlu0 %1322 }
 0x240   :  { %1508 = vperm.xlu0 %2329, %v1077_v3   ;;  %v1080_v3 = vmul.f32 %v3488_v40, %v4439_v39  ;;  %v4446_v39 = vld [vmem:[#allocation48_spill] sm:$0xff] }
 0x241   :  { %v3746_v23 = vpop.permute.xlu1 %1319  ;;  %1505 = vperm.xlu1 %2330, %v1076_v51   ;;  %v1087_v6 = vmul.f32 %v3524_v34, %v4446_v39  ;;  %v4449_v39 = vld [vmem:[#allocation49_spill] sm:$0xff] }
 0x243   :  { %v3752_v28 = vpop.permute.xlu0 %1328 }
 0x244   :  { %4437 = vst [vmem:[#allocation14_spill] sm:$0xff] %v3752_v28  ;;  %1514 = vperm.xlu0 %2329, %v1079_v11   ;;  %v4442_v11 = vld [vmem:[#allocation45_spill] sm:$0xff] }
 0x245   :  { %v3754_v43 = vpop.permute.xlu1 %1325  ;;  %1511 = vperm.xlu1 %2330, %v1078_v59   ;;  %v1082_v31 = vmul.f32 %v3496_v50, %v4442_v11  ;;  %v1643_v11 = vadd.s32 4294967280, %v3767_v47 }
 0x247   :  { %v3760_v14 = vpop.permute.xlu0 %1334 }
 0x248   :  { %4440 = vst [vmem:[#allocation15_spill] sm:$0xff] %v3760_v14  ;;  %1520 = vperm.xlu0 %2329, %v1081_v19   ;;  %v1088_v19 = vmul.f32 %v3520_v18, %v4445_v55  ;;  %v1089_v14 = vmul.f32 %v3532_v45, %v4449_v39  ;;  %v4451_v39 = vld [vmem:[#allocation63_spill] sm:$0xff] }
 0x249   :  { %v3762_v51 = vpop.permute.xlu1 %1331  ;;  %1517 = vperm.xlu1 %2330, %v1080_v3   ;;  %v4447_v3 = vld [vmem:[#allocation12_spill] sm:$0xff] }
 0x24a   :  { %v3782_v63 = vsub.s32 %v3767_v47, %v4447_v3  ;;  %v3785_v50 = vsub.s32 %v1636_v7, %v4447_v3  ;;  %v3796_v12 = vsub.s32 %v1643_v11, %v4447_v3  ;;  %v1103_v11 = vmul.f32 %v3588_v4, %v4451_v39  ;;  %v4453_v39 = vld [vmem:[#allocation66_spill] sm:$0xff] }
 0x24b   :  { %v3771_v59 = vpop.permute.xlu0 %1340  ;;  %v1104_v28 = vmul.f32 %v3584_v20, %v4453_v39 }
 0x24c   :  { %4443 = vst [vmem:[#allocation16_spill] sm:$0xff] %v3771_v59  ;;  %1535 = vperm.xlu0 %2329, %v1086_v29   ;;  %v1650_v29 = vadd.s32 4294967272, %v3767_v47  ;;  %v4448_v59 = vld [vmem:[#allocation64_spill] sm:$0xff] }
 0x24d   :  { %v3774_v40 = vpop.permute.xlu1 %1337  ;;  %1523 = vperm.xlu1 %2330, %v1082_v31   ;;  %v1102_v18 = vmul.f32 %v3576_v0, %v4448_v59  ;;  %v1664_v0 = vadd.s32 4294967256, %v3767_v47 }
 0x24e   :  { %4444 = vst [vmem:[#allocation17_spill] sm:$0xff] %v3774_v40 }
 0x24f   :  { %v1347_v8 = vpop.permute.xlu0 %1346 }
 0x250   :  { %1541 = vperm.xlu0 %2329, %v1088_v19   ;;  %v1827_v34 = vrot.slane %v1347_v8, %v3785_v50  ;;  %v1657_v19 = vadd.s32 4294967264, %v3767_v47  ;;  %v4450_v8 = vld [vmem:[#allocation52_spill] sm:$0xff] }
 0x251   :  { %v1344_v31 = vpop.permute.xlu1 %1343  ;;  %1538 = vperm.xlu1 %2330, %v1087_v6   ;;  %v3801_v6 = vsub.s32 %v1650_v29, %v4447_v3  ;;  %v1090_v45 = vmul.f32 %v3528_v32, %v4450_v8  ;;  %v3816_v32 = vsub.s32 %v1664_v0, %v4447_v3 }
 0x252   :  { %v1823_v55 = vrot.slane %v1344_v31, %v3782_v63  ;;  %v3811_v29 = vsub.s32 %v1657_v19, %v4447_v3 }
 0x253   :  { %v1353_v7 = vpop.permute.xlu0 %1352 }
 0x254   :  { %v1828_v40 = vsel %vm1641_vm0, %v1827_v34, %v1823_v55  ;;  %1583 = vperm.xlu0 %2329, %v1102_v18   ;;  %v1837_v25 = vrot.slane %v1353_v7, %v3801_v6  ;;  %v1671_v18 = vadd.s32 4294967248, %v3767_v47  ;;  %v1678_v55 = vadd.s32 4294967240, %v3767_v47  ;;  %v4452_v7 = vld [vmem:[#allocation51_spill] sm:$0xff] }
 0x255   :  { %v1350_v59 = vpop.permute.xlu1 %1349  ;;  %1544 = vperm.xlu1 %2330, %v1089_v14   ;;  %v1091_v8 = vmul.f32 %v3540_v56, %v4452_v7  ;;  %v4455_v7 = vld [vmem:[#allocation65_spill] sm:$0xff] }
 0x256   :  { %v1832_v31 = vrot.slane %v1350_v59, %v3796_v12  ;;  %v3827_v0 = vsub.s32 %v1671_v18, %v4447_v3  ;;  %v3832_v56 = vsub.s32 %v1678_v55, %v4447_v3  ;;  %v1105_v39 = vmul.f32 %v3596_v38, %v4455_v7 }
 0x257   :  { %v1359_v34 = vpop.permute.xlu0 %1358 }
 0x258   :  { %v1833_v14 = vsel %vm1648_vm1, %v1832_v31, %v1828_v40  ;;  %1547 = vperm.xlu0 %2329, %v1090_v45   ;;  %v1847_v40 = vrot.slane %v1359_v34, %v3816_v32  ;;  %v1685_v31 = vadd.s32 4294967232, %v3767_v47  ;;  %v4454_v34 = vld [vmem:[#allocation54_spill] sm:$0xff] }
 0x259   :  { %v1356_v59 = vpop.permute.xlu1 %1355  ;;  %v1838_v4 = vsel %vm1655_vm2, %v1837_v25, %v1833_v14  ;;  %1586 = vperm.xlu1 %2330, %v1103_v11   ;;  %v1692_v11 = vadd.s32 4294967224, %v3767_v47 }
 0x25a   :  { %v1842_v19 = vrot.slane %v1356_v59, %v3811_v29  ;;  %v1092_v59 = vmul.f32 %v3536_v46, %v4454_v34  ;;  %v3843_v55 = vsub.s32 %v1685_v31, %v4447_v3  ;;  %v4457_v34 = vld [vmem:[#allocation68_spill] sm:$0xff] }
 0x25b   :  { %v1365_v45 = vpop.permute.xlu0 %1364  ;;  %v3848_v46 = vsub.s32 %v1692_v11, %v4447_v3  ;;  %v1106_v7 = vmul.f32 %v3592_v42, %v4457_v34 }
 0x25c   :  { %v1843_v25 = vsel %vm1662_vm3, %v1842_v19, %v1838_v4  ;;  %1550 = vperm.xlu0 %2329, %v1091_v8   ;;  %v1857_v4 = vrot.slane %v1365_v45, %v3832_v56  ;;  %v1699_v19 = vadd.s32 4294967216, %v3767_v47  ;;  %v4456_v45 = vld [vmem:[#allocation53_spill] sm:$0xff] }
 0x25d   :  { %v1362_v14 = vpop.permute.xlu1 %1361  ;;  %v1848_v20 = vsel %vm1669_vm4, %v1847_v40, %v1843_v25  ;;  %1589 = vperm.xlu1 %2330, %v1104_v28   ;;  %v1706_v40 = vadd.s32 4294967208, %v3767_v47 }
 0x25e   :  { %v1852_v18 = vrot.slane %v1362_v14, %v3827_v0  ;;  %v1093_v14 = vmul.f32 %v3548_v2, %v4456_v45  ;;  %v3859_v11 = vsub.s32 %v1699_v19, %v4447_v3  ;;  %v4459_v45 = vld [vmem:[#allocation67_spill] sm:$0xff] }
 0x25f   :  { %v1371_v8 = vpop.permute.xlu0 %1370  ;;  %v3864_v2 = vsub.s32 %v1706_v40, %v4447_v3  ;;  %v1107_v34 = vmul.f32 %v3604_v44, %v4459_v45 }
 0x260   :  { %v1853_v28 = vsel %vm1676_vm5, %v1852_v18, %v1848_v20  ;;  %1553 = vperm.xlu0 %2329, %v1092_v59   ;;  %v1867_v20 = vrot.slane %v1371_v8, %v3848_v46  ;;  %v1713_v18 = vadd.s32 4294967200, %v3767_v47  ;;  %v4458_v8 = vld [vmem:[#allocation56_spill] sm:$0xff] }
 0x261   :  { %v1368_v25 = vpop.permute.xlu1 %1367  ;;  %v1858_v38 = vsel %vm1683_vm6, %v1857_v4, %v1853_v28  ;;  %1592 = vperm.xlu1 %2330, %v1105_v39   ;;  %v1720_v4 = vadd.s32 4294967192, %v3767_v47 }
 0x262   :  { %v1862_v31 = vrot.slane %v1368_v25, %v3843_v55  ;;  %v1094_v25 = vmul.f32 %v3544_v60, %v4458_v8  ;;  %v3875_v40 = vsub.s32 %v1713_v18, %v4447_v3  ;;  %v4461_v8 = vld [vmem:[#allocation70_spill] sm:$0xff] }
 0x263   :  { %v1377_v59 = vpop.permute.xlu0 %1376  ;;  %v3880_v60 = vsub.s32 %v1720_v4, %v4447_v3  ;;  %v1108_v45 = vmul.f32 %v3600_v5, %v4461_v8  ;;  %v4466_v8 = vld [vmem:[#allocation72_spill] sm:$0xff] }
 0x264   :  { %v1863_v39 = vsel %vm1690_vm7, %v1862_v31, %v1858_v38  ;;  %1556 = vperm.xlu0 %2329, %v1093_v14   ;;  %v1877_v38 = vrot.slane %v1377_v59, %v3864_v2  ;;  %v1727_v31 = vadd.s32 4294967184, %v3767_v47  ;;  %v4460_v59 = vld [vmem:[#allocation55_spill] sm:$0xff] }
 0x265   :  { %v1374_v28 = vpop.permute.xlu1 %1373  ;;  %v1868_v42 = vsel %vm1697_vm8, %v1867_v20, %v1863_v39  ;;  %1595 = vperm.xlu1 %2330, %v1106_v7   ;;  %v1734_v20 = vadd.s32 4294967176, %v3767_v47 }
 0x266   :  { %v1872_v19 = vrot.slane %v1374_v28, %v3859_v11  ;;  %v1095_v28 = vmul.f32 %v3556_v13, %v4460_v59  ;;  %v3891_v4 = vsub.s32 %v1727_v31, %v4447_v3 }
 0x267   :  { %v1383_v14 = vpop.permute.xlu0 %1382 }
 0x268   :  { %v1873_v7 = vsel %vm1704_vm9, %v1872_v19, %v1868_v42  ;;  %1559 = vperm.xlu0 %2329, %v1094_v25   ;;  %v1887_v42 = vrot.slane %v1383_v14, %v3880_v60  ;;  %v3895_v19 = vsub.s32 %v1734_v20, %v4447_v3 }
 0x269   :  { %v1380_v39 = vpop.permute.xlu1 %1379  ;;  %v1878_v44 = vsel %vm4305_vm10, %v1877_v38, %v1873_v7  ;;  %1598 = vperm.xlu1 %2330, %v1107_v34   ;;  %v4462_v38 = vld [vmem:[#allocation58_spill] sm:$0xff]  ;;  %v4463_v7 = vld [vmem:[#allocation69_spill] sm:$0xff] }
 0x26a   :  { %v1882_v18 = vrot.slane %v1380_v39, %v3875_v40  ;;  %v1096_v5 = vmul.f32 %v3552_v10, %v4462_v38  ;;  %v1109_v39 = vmul.f32 %v3612_v61, %v4463_v7  ;;  %v4469_v38 = vld [vmem:[#allocation5_spill] sm:$0xff] }
 0x26b   :  { %v1389_v25 = vpop.permute.xlu0 %1388  ;;  %v4470_v7 = vld [vmem:[#allocation57_spill] sm:$0xff] }
 0x26c   :  { %v1883_v47 = vsel %vm1718_vm11, %v1882_v18, %v1878_v44  ;;  %1562 = vperm.xlu0 %2329, %v1095_v28   ;;  %v1897_v31 = vrot.slane %v1389_v25, %v3895_v19  ;;  %v4465_v28 = vld [vmem:[#allocation44_spill] sm:$0xff] }
 0x26d   :  { %v1386_v13 = vpop.permute.xlu1 %1385  ;;  %v1888_v34 = vsel %vm1725_vm12, %v1887_v42, %v1883_v47  ;;  %1601 = vperm.xlu1 %2330, %v1108_v45   ;;  %v1083_v10 = vmul.f32 %v3508_v15, %v4465_v28  ;;  %v4467_v45 = vld [vmem:[#allocation3_spill] sm:$0xff]  ;;  %v4471_v15 = vld [vmem:[#allocation82_spill] sm:$0xff] }
 0x26e   :  { %v1892_v14 = vrot.slane %v1386_v13, %v3891_v4  ;;  %v1110_v42 = vmul.f32 %v4467_v45, %v4466_v8  ;;  %v4474_v45 = vld [vmem:[#allocation47_spill] sm:$0xff] }
 0x26f   :  { %v1395_v44 = vpop.permute.xlu0 %1394 }
 0x270   :  { %v1893_v3 = vsel %vm1732_vm13, %v1892_v14, %v1888_v34  ;;  %1565 = vperm.xlu0 %2329, %v1096_v5   ;;  %v1906_v18 = vrot.slane %v1395_v44, %v3785_v50  ;;  %v4468_v34 = vld [vmem:[#allocation71_spill] sm:$0xff] }
 0x271   :  { %v3906_v20 = vsel %vm1739_vm14, %v1897_v31, %v1893_v3  ;;  %v1392_v59 = vpop.permute.xlu1 %1391  ;;  %1604 = vperm.xlu1 %2330, %v1109_v39   ;;  %v1111_v5 = vmul.f32 %v4469_v38, %v4468_v34  ;;  %v1097_v39 = vmul.f32 %v4471_v15, %v4470_v7  ;;  %v4477_v7 = vld [vmem:[#allocation80_spill] sm:$0xff] }
 0x272   :  { %4464 = vst [vmem:[#allocation18_spill] sm:$0xff] %v3906_v20  ;;  %v1902_v61 = vrot.slane %v1392_v59, %v3782_v63 }
 0x273   :  { %v1401_v25 = vpop.permute.xlu0 %1400 }
 0x274   :  { %v1907_v47 = vsel %vm1641_vm0, %v1906_v18, %v1902_v61  ;;  %1526 = vperm.xlu0 %2329, %v1083_v10   ;;  %v1916_v31 = vrot.slane %v1401_v25, %v3801_v6  ;;  %v4472_v10 = vld [vmem:[#allocation60_spill] sm:$0xff]  ;;  %v4473_v18 = vld [vmem:[#allocation81_spill] sm:$0xff] }
 0x275   :  { %v1398_v13 = vpop.permute.xlu1 %1397  ;;  %1607 = vperm.xlu1 %2330, %v1110_v42   ;;  %v1098_v61 = vmul.f32 %v4473_v18, %v4472_v10  ;;  %v4475_v42 = vld [vmem:[#allocation79_spill] sm:$0xff] }
 0x276   :  { %v1911_v14 = vrot.slane %v1398_v13, %v3796_v12  ;;  %v1084_v13 = vmul.f32 %v4475_v42, %v4474_v45  ;;  %v4481_v45 = vld [vmem:[#allocation7_spill] sm:$0xff] }
 0x277   :  { %v1407_v44 = vpop.permute.xlu0 %1406 }
 0x278   :  { %v1912_v3 = vsel %vm1648_vm1, %v1911_v14, %v1907_v47  ;;  %1610 = vperm.xlu0 %2329, %v1111_v5   ;;  %v1926_v34 = vrot.slane %v1407_v44, %v3816_v32  ;;  %v4476_v14 = vld [vmem:[#allocation46_spill] sm:$0xff] }
 0x279   :  { %v1404_v59 = vpop.permute.xlu1 %1403  ;;  %v1917_v28 = vsel %vm1655_vm2, %v1916_v31, %v1912_v3  ;;  %1568 = vperm.xlu1 %2330, %v1097_v39   ;;  %v1085_v15 = vmul.f32 %v4477_v7, %v4476_v14  ;;  %v4478_v31 = vld [vmem:[#allocation74_spill] sm:$0xff]  ;;  %v4479_v3 = vld [vmem:[#allocation4_spill] sm:$0xff] }
 0x27a   :  { %v1921_v8 = vrot.slane %v1404_v59, %v3811_v29  ;;  %v1112_v59 = vmul.f32 %v4479_v3, %v4478_v31  ;;  %v4485_v31 = vld [vmem:[#allocation6_spill] sm:$0xff] }
 0x27b   :  { %v1413_v38 = vpop.permute.xlu0 %1412 }
 0x27c   :  { %v1922_v25 = vsel %vm1662_vm3, %v1921_v8, %v1917_v28  ;;  %1571 = vperm.xlu0 %2329, %v1098_v61   ;;  %v1936_v10 = vrot.slane %v1413_v38, %v3832_v56  ;;  %v4480_v8 = vld [vmem:[#allocation73_spill] sm:$0xff] }
 0x27d   :  { %v1410_v47 = vpop.permute.xlu1 %1409  ;;  %v1927_v5 = vsel %vm1669_vm4, %v1926_v34, %v1922_v25  ;;  %1529 = vperm.xlu1 %2330, %v1084_v13   ;;  %v1113_v42 = vmul.f32 %v4481_v45, %v4480_v8  ;;  %v4482_v34 = vld [vmem:[#allocation59_spill] sm:$0xff]  ;;  %v4483_v25 = vld [vmem:[#allocation84_spill] sm:$0xff] }
 0x27e   :  { %v1931_v39 = vrot.slane %v1410_v47, %v3827_v0  ;;  %v1099_v47 = vmul.f32 %v4483_v25, %v4482_v34  ;;  %v4489_v34 = vld [vmem:[#allocation8_spill] sm:$0xff] }
 0x27f   :  { %v1419_v18 = vpop.permute.xlu0 %1418 }
 0x280   :  { %v1932_v44 = vsel %vm1676_vm5, %v1931_v39, %v1927_v5  ;;  %1532 = vperm.xlu0 %2329, %v1085_v15   ;;  %v1946_v14 = vrot.slane %v1419_v18, %v3848_v46  ;;  %v4484_v39 = vld [vmem:[#allocation76_spill] sm:$0xff] }
 0x281   :  { %v1416_v28 = vpop.permute.xlu1 %1415  ;;  %v1937_v61 = vsel %vm1683_vm6, %v1936_v10, %v1932_v44  ;;  %1613 = vperm.xlu1 %2330, %v1112_v59   ;;  %v1114_v3 = vmul.f32 %v4485_v31, %v4484_v39  ;;  %v4486_v10 = vld [vmem:[#allocation62_spill] sm:$0xff]  ;;  %v4487_v44 = vld [vmem:[#allocation83_spill] sm:$0xff] }
 0x282   :  { %v1941_v13 = vrot.slane %v1416_v28, %v3843_v55  ;;  %v1100_v28 = vmul.f32 %v4487_v44, %v4486_v10 }
 0x283   :  { %v1425_v7 = vpop.permute.xlu0 %1424 }
 0x284   :  { %v1942_v38 = vsel %vm1690_vm7, %v1941_v13, %v1937_v61  ;;  %1616 = vperm.xlu0 %2329, %v1113_v42   ;;  %v1956_v8 = vrot.slane %v1425_v7, %v3864_v2  ;;  %v4488_v13 = vld [vmem:[#allocation75_spill] sm:$0xff] }
 0x285   :  { %v1422_v5 = vpop.permute.xlu1 %1421  ;;  %v1947_v15 = vsel %vm1697_vm8, %v1946_v14, %v1942_v38  ;;  %1574 = vperm.xlu1 %2330, %v1099_v47   ;;  %v1115_v25 = vmul.f32 %v4489_v34, %v4488_v13  ;;  %v4490_v14 = vld [vmem:[#allocation61_spill] sm:$0xff] }
 0x286   :  { %v1951_v59 = vrot.slane %v1422_v5, %v3859_v11  ;;  %v4491_v38 = vld [vmem:[#allocation85_spill] sm:$0xff] }
 0x287   :  { %v1431_v45 = vpop.permute.xlu0 %1430  ;;  %v1101_v5 = vmul.f32 %v4491_v38, %v4490_v14 }
 0x288   :  { %v1952_v18 = vsel %vm1704_vm9, %v1951_v59, %v1947_v15  ;;  %1619 = vperm.xlu0 %2329, %v1114_v3   ;;  %v1966_v39 = vrot.slane %v1431_v45, %v3880_v60  ;;  %v4492_v59 = vld [vmem:[#allocation77_spill] sm:$0xff] }
 0x289   :  { %v1428_v61 = vpop.permute.xlu1 %1427  ;;  %v1957_v42 = vsel %vm4305_vm10, %v1956_v8, %v1952_v18  ;;  %1577 = vperm.xlu1 %2330, %v1100_v28   ;;  %v1117_v10 = vmul.f32 %v3642_v24, %v4492_v59  ;;  %v4493_v28 = vld [vmem:[#allocation78_spill] sm:$0xff] }
 0x28a   :  { %v1961_v47 = vrot.slane %v1428_v61, %v3875_v40  ;;  %v1116_v8 = vmul.f32 %v3640_v54, %v4493_v28 }
 0x28b   :  { %v1437_v31 = vpop.permute.xlu0 %1436 }
 0x28c   :  { %v1962_v7 = vsel %vm1718_vm11, %v1961_v47, %v1957_v42  ;;  %1622 = vperm.xlu0 %2329, %v1115_v25   ;;  %v1976_v18 = vrot.slane %v1437_v31, %v3895_v19 }
 0x28d   :  { %1580 = vperm.xlu1 %2330, %v1101_v5   ;;  %v1434_v15 = vpop.permute.xlu1 %1433  ;;  %v1967_v3 = vsel %vm1725_vm12, %v1966_v39, %v1962_v7  ;;  %v8_v39 = vstv %s4287_s2 }
 0x28e   :  { %v1971_v44 = vrot.slane %v1434_v15, %v3891_v4  ;;  %9 = vst [vmem:[#allocation2] sm:$0x1] %v8_v39 }
 0x28f   :  { %v1443_v61 = vpop.permute.xlu0 %1442 }
 0x290   :  { %v1972_v45 = vsel %vm1732_vm13, %v1971_v44, %v1967_v3  ;;  %1628 = vperm.xlu0 %2329, %v1117_v10   ;;  %v1985_v34 = vrot.slane %v1443_v61, %v3785_v50 }
 0x291   :  { %v3971_v42 = vsel %vm1739_vm14, %v1976_v18, %v1972_v45  ;;  %1625 = vperm.xlu1 %2330, %v1116_v8   ;;  %v1440_v13 = vpop.permute.xlu1 %1439 }
 0x292   :  { %4494 = vst [vmem:[#allocation19_spill] sm:$0xff] %v3971_v42  ;;  %v1981_v24 = vrot.slane %v1440_v13, %v3782_v63 }
 0x293   :  { %v1449_v25 = vpop.permute.xlu0 %1448 }
 0x294   :  { %v1986_v47 = vsel %vm1641_vm0, %v1985_v34, %v1981_v24  ;;  %v1995_v38 = vrot.slane %v1449_v25, %v3801_v6 }
 0x295   :  { %v1446_v14 = vpop.permute.xlu1 %1445 }
 0x296   :  { %v1990_v54 = vrot.slane %v1446_v14, %v3796_v12 }
 0x297   :  { %v1455_v5 = vpop.permute.xlu0 %1454 }
 0x298   :  { %v1991_v31 = vsel %vm1648_vm1, %v1990_v54, %v1986_v47  ;;  %v2005_v59 = vrot.slane %v1455_v5, %v3816_v32 }
 0x299   :  { %v1452_v7 = vpop.permute.xlu1 %1451  ;;  %v1996_v15 = vsel %vm1655_vm2, %v1995_v38, %v1991_v31 }
 0x29a   :  { %v2000_v3 = vrot.slane %v1452_v7, %v3811_v29 }
 0x29b   :  { %v1461_v10 = vpop.permute.xlu0 %1460 }
 0x29c   :  { %v2001_v44 = vsel %vm1662_vm3, %v2000_v3, %v1996_v15  ;;  %v2015_v61 = vrot.slane %v1461_v10, %v3832_v56 }
 0x29d   :  { %v1458_v28 = vpop.permute.xlu1 %1457  ;;  %v2006_v8 = vsel %vm1669_vm4, %v2005_v59, %v2001_v44 }
 0x29e   :  { %v2010_v18 = vrot.slane %v1458_v28, %v3827_v0 }
 0x29f   :  { %v1467_v45 = vpop.permute.xlu0 %1466 }
 0x2a0   :  { %v2011_v13 = vsel %vm1676_vm5, %v2010_v18, %v2006_v8  ;;  %v2025_v47 = vrot.slane %v1467_v45, %v3848_v46 }
 0x2a1   :  { %v1464_v34 = vpop.permute.xlu1 %1463  ;;  %v2016_v24 = vsel %vm1683_vm6, %v2015_v61, %v2011_v13 }
 0x2a2   :  { %v2020_v25 = vrot.slane %v1464_v34, %v3843_v55 }
 0x2a3   :  { %v1473_v14 = vpop.permute.xlu0 %1472 }
 0x2a4   :  { %v2021_v54 = vsel %vm1690_vm7, %v2020_v25, %v2016_v24  ;;  %v2035_v31 = vrot.slane %v1473_v14, %v3864_v2 }
 0x2a5   :  { %v1470_v38 = vpop.permute.xlu1 %1469  ;;  %v2026_v5 = vsel %vm1697_vm8, %v2025_v47, %v2021_v54 }
 0x2a6   :  { %v2030_v39 = vrot.slane %v1470_v38, %v3859_v11 }
 0x2a7   :  { %v1479_v7 = vpop.permute.xlu0 %1478 }
 0x2a8   :  { %v2031_v15 = vsel %vm1704_vm9, %v2030_v39, %v2026_v5  ;;  %v2045_v44 = vrot.slane %v1479_v7, %v3880_v60 }
 0x2a9   :  { %v1476_v3 = vpop.permute.xlu1 %1475  ;;  %v2036_v59 = vsel %vm4305_vm10, %v2035_v31, %v2031_v15 }
 0x2aa   :  { %v2040_v10 = vrot.slane %v1476_v3, %v3875_v40 }
 0x2ab   :  { %v1485_v28 = vpop.permute.xlu0 %1484 }
 0x2ac   :  { %v2041_v8 = vsel %vm1718_vm11, %v2040_v10, %v2036_v59  ;;  %v2055_v13 = vrot.slane %v1485_v28, %v3895_v19 }
 0x2ad   :  { %v1482_v18 = vpop.permute.xlu1 %1481  ;;  %v2046_v61 = vsel %vm1725_vm12, %v2045_v44, %v2041_v8 }
 0x2ae   :  { %v2050_v45 = vrot.slane %v1482_v18, %v3891_v4 }
 0x2af   :  { %v1491_v34 = vpop.permute.xlu0 %1490 }
 0x2b0   :  { %v2051_v24 = vsel %vm1732_vm13, %v2050_v45, %v2046_v61  ;;  %v2064_v14 = vrot.slane %v1491_v34, %v3785_v50 }
 0x2b1   :  { %v4007_v25 = vsel %vm1739_vm14, %v2055_v13, %v2051_v24  ;;  %v1488_v47 = vpop.permute.xlu1 %1487 }
 0x2b2   :  { %v2060_v54 = vrot.slane %v1488_v47, %v3782_v63 }
 0x2b3   :  { %v1497_v38 = vpop.permute.xlu0 %1496 }
 0x2b4   :  { %v2065_v5 = vsel %vm1641_vm0, %v2064_v14, %v2060_v54  ;;  %v2074_v7 = vrot.slane %v1497_v38, %v3801_v6 }
 0x2b5   :  { %v1494_v39 = vpop.permute.xlu1 %1493 }
 0x2b6   :  { %v2069_v31 = vrot.slane %v1494_v39, %v3796_v12 }
 0x2b7   :  { %v1503_v15 = vpop.permute.xlu0 %1502 }
 0x2b8   :  { %v2070_v3 = vsel %vm1648_vm1, %v2069_v31, %v2065_v5  ;;  %v2084_v28 = vrot.slane %v1503_v15, %v3816_v32 }
 0x2b9   :  { %v1500_v59 = vpop.permute.xlu1 %1499  ;;  %v2075_v10 = vsel %vm1655_vm2, %v2074_v7, %v2070_v3 }
 0x2ba   :  { %v2079_v44 = vrot.slane %v1500_v59, %v3811_v29 }
 0x2bb   :  { %v1509_v8 = vpop.permute.xlu0 %1508 }
 0x2bc   :  { %v2080_v18 = vsel %vm1662_vm3, %v2079_v44, %v2075_v10  ;;  %v2094_v34 = vrot.slane %v1509_v8, %v3832_v56 }
 0x2bd   :  { %v1506_v61 = vpop.permute.xlu1 %1505  ;;  %v2085_v45 = vsel %vm1669_vm4, %v2084_v28, %v2080_v18 }
 0x2be   :  { %v2089_v13 = vrot.slane %v1506_v61, %v3827_v0 }
 0x2bf   :  { %v1515_v24 = vpop.permute.xlu0 %1514 }
 0x2c0   :  { %v2090_v47 = vsel %vm1676_vm5, %v2089_v13, %v2085_v45  ;;  %v2104_v5 = vrot.slane %v1515_v24, %v3848_v46 }
 0x2c1   :  { %v1512_v14 = vpop.permute.xlu1 %1511  ;;  %v2095_v54 = vsel %vm1683_vm6, %v2094_v34, %v2090_v47 }
 0x2c2   :  { %v2099_v38 = vrot.slane %v1512_v14, %v3843_v55  ;;  %v4495_v14 = vld [vmem:[#allocation10_spill] sm:$0xff] }
 0x2c3   :  { %v1521_v39 = vpop.permute.xlu0 %1520 }
 0x2c4   :  { %v2100_v31 = vsel %vm1690_vm7, %v2099_v38, %v2095_v54  ;;  %v2114_v59 = vrot.slane %v1521_v39, %v3864_v2  ;;  %v1640_v54 = vrot.slane %v4495_v14, %v3785_v50  ;;  %v1647_v38 = vrot.slane %v3658_v16, %v3796_v12  ;;  %v4496_v39 = vld [vmem:[#allocation9_spill] sm:$0xff] }
 0x2c5   :  { %v1518_v7 = vpop.permute.xlu1 %1517  ;;  %v2105_v15 = vsel %vm1697_vm8, %v2104_v5, %v2100_v31  ;;  %v1635_v31 = vrot.slane %v4496_v39, %v3782_v63  ;;  %v1661_v16 = vrot.slane %v3666_v57, %v3811_v29  ;;  %v1748_v14 = vrot.slane %v3712_v62, %v3785_v50 }
 0x2c6   :  { %v2109_v3 = vrot.slane %v1518_v7, %v3859_v11  ;;  %v1744_v7 = vrot.slane %v3714_v52, %v3782_v63  ;;  %v1654_v52 = vrot.slane %v3656_v30, %v3801_v6  ;;  %v1675_v62 = vrot.slane %v3674_v36, %v3827_v0 }
 0x2c7   :  { %v4030_v10 = vpop.permute.xlu0 %1535 }
 0x2c8   :  { %v2110_v44 = vsel %vm1704_vm9, %v2109_v3, %v2105_v15  ;;  %v1642_v3 = vsel %vm1641_vm0, %v1640_v54, %v1635_v31  ;;  %v1749_v39 = vsel %vm1641_vm0, %v1748_v14, %v1744_v7  ;;  %v1758_v31 = vrot.slane %v3720_v21, %v3801_v6 }
 0x2c9   :  { %v4033_v28 = vpop.permute.xlu1 %1523  ;;  %v4036_v8 = vsel %vm4305_vm10, %v2114_v59, %v2110_v44  ;;  %v1753_v59 = vrot.slane %v3722_v41, %v3796_v12  ;;  %v1649_v44 = vsel %vm1648_vm1, %v1647_v38, %v1642_v3  ;;  %v1763_v38 = vrot.slane %v3730_v58, %v3811_v29 }
 0x2ca   :  { %v1656_v54 = vsel %vm1655_vm2, %v1654_v52, %v1649_v44  ;;  %v1668_v7 = vrot.slane %v3664_v26, %v3816_v32  ;;  %v1689_v21 = vrot.slane %v3682_v17, %v3843_v55  ;;  %v1768_v14 = vrot.slane %v3728_v1, %v3816_v32 }
 0x2cb   :  { %v4038_v18 = vpop.permute.xlu0 %1541  ;;  %v1754_v41 = vsel %vm1648_vm1, %v1753_v59, %v1749_v39  ;;  %v1663_v57 = vsel %vm1662_vm3, %v1661_v16, %v1656_v54  ;;  %v1773_v16 = vrot.slane %v3738_v35, %v3827_v0  ;;  %v1682_v52 = vrot.slane %v3672_v37, %v3832_v56 }
 0x2cc   :  { %v1759_v3 = vsel %vm1655_vm2, %v1758_v31, %v1754_v41  ;;  %v1670_v59 = vsel %vm1669_vm4, %v1668_v7, %v1663_v57  ;;  %v1703_v1 = vrot.slane %v3690_v22, %v3859_v11  ;;  %v1778_v57 = vrot.slane %v3736_v27, %v3832_v56 }
 0x2cd   :  { %v4040_v61 = vpop.permute.xlu1 %1538  ;;  %v1764_v58 = vsel %vm1662_vm3, %v1763_v38, %v1759_v3  ;;  %v1677_v36 = vsel %vm1676_vm5, %v1675_v62, %v1670_v59  ;;  %v1783_v38 = vrot.slane %v3746_v23, %v3843_v55  ;;  %v1696_v62 = vrot.slane %v3680_v9, %v3848_v46 }
 0x2ce   :  { %v1769_v39 = vsel %vm1669_vm4, %v1768_v14, %v1764_v58  ;;  %v1684_v41 = vsel %vm1683_vm6, %v1682_v52, %v1677_v36  ;;  %v1793_v59 = vrot.slane %v3754_v43, %v3859_v11  ;;  %v1717_v27 = vrot.slane %v3698_v48, %v3875_v40 }
 0x2cf   :  { %v4042_v45 = vpop.permute.xlu0 %1583  ;;  %v1774_v35 = vsel %vm1676_vm5, %v1773_v16, %v1769_v39  ;;  %v1691_v17 = vsel %vm1690_vm7, %v1689_v21, %v1684_v41  ;;  %v1788_v58 = vrot.slane %v3744_v33, %v3848_v46  ;;  %v1710_v16 = vrot.slane %v3688_v53, %v3864_v2  ;;  %v4497_v39 = vld [vmem:[#allocation14_spill] sm:$0xff]  ;;  %v4498_v53 = vld [vmem:[#allocation11_spill] sm:$0xff] }
 0x2d0   :  { %v1779_v31 = vsel %vm1683_vm6, %v1778_v57, %v1774_v35  ;;  %v1698_v3 = vsel %vm1697_vm8, %v1696_v62, %v1691_v17  ;;  %v1803_v52 = vrot.slane %v3762_v51, %v3875_v40  ;;  %v1731_v33 = vrot.slane %v3706_v49, %v3891_v4  ;;  %v4499_v49 = vld [vmem:[#allocation17_spill] sm:$0xff] }
 0x2d1   :  { %v4044_v13 = vpop.permute.xlu1 %1544  ;;  %v1784_v23 = vsel %vm1690_vm7, %v1783_v38, %v1779_v31  ;;  %v1705_v22 = vsel %vm1704_vm9, %v1703_v1, %v1698_v3  ;;  %v1798_v41 = vrot.slane %v4497_v39, %v3864_v2  ;;  %v1724_v38 = vrot.slane %v4498_v53, %v3880_v60  ;;  %v4502_v39 = vld [vmem:[#allocation16_spill] sm:$0xff] }
 0x2d2   :  { %v1789_v36 = vsel %vm1697_vm8, %v1788_v58, %v1784_v23  ;;  %v1712_v14 = vsel %vm4305_vm10, %v1710_v16, %v1705_v22  ;;  %v2143_v17 = vrot.slane %v4040_v61, %v3785_v50  ;;  %v1813_v31 = vrot.slane %v4499_v49, %v3891_v4  ;;  %v4500_v23 = vld [vmem:[#allocation13_spill] sm:$0xff]  ;;  %v4501_v61 = vld [vmem:[#allocation15_spill] sm:$0xff] }
 0x2d3   :  { %v4046_v34 = vpop.permute.xlu0 %1547  ;;  %v1794_v43 = vsel %vm1704_vm9, %v1793_v59, %v1789_v36  ;;  %v1719_v48 = vsel %vm1718_vm11, %v1717_v27, %v1712_v14  ;;  %v2139_v3 = vrot.slane %v4030_v10, %v3782_v63  ;;  %v1738_v59 = vrot.slane %v4500_v23, %v3895_v19 }
 0x2d4   :  { %v1799_v1 = vsel %vm4305_vm10, %v1798_v41, %v1794_v43  ;;  %v1726_v51 = vsel %vm1725_vm12, %v1724_v38, %v1719_v48  ;;  %v1808_v27 = vrot.slane %v4501_v61, %v3880_v60  ;;  %v2119_v16 = vrot.slane %v4033_v28, %v3875_v40 }
 0x2d5   :  { %v4048_v24 = vpop.permute.xlu1 %1586  ;;  %v1804_v62 = vsel %vm1718_vm11, %v1803_v52, %v1799_v1  ;;  %v1733_v22 = vsel %vm1732_vm13, %v1731_v33, %v1726_v51  ;;  %v2144_v36 = vsel %vm1641_vm0, %v2143_v17, %v2139_v3  ;;  %v2153_v14 = vrot.slane %v4044_v13, %v3801_v6 }
 0x2d6   :  { %v1809_v10 = vsel %vm1725_vm12, %v1808_v27, %v1804_v62  ;;  %v2148_v43 = vrot.slane %v4038_v18, %v3796_v12  ;;  %v1740_v33 = vsel %vm1739_vm14, %v1738_v59, %v1733_v22  ;;  %v1818_v41 = vrot.slane %v4502_v39, %v3895_v19 }
 0x2d7   :  { %v4050_v47 = vpop.permute.xlu0 %1550  ;;  %v1814_v28 = vsel %vm1732_vm13, %v1813_v31, %v1809_v10  ;;  %vm2303_vm10 = vcmask 1041408   ;;  %v2295_v13 = vsel %vm2294_vm15, %v4007_v25, %v1740_v33  ;;  %v2158_v18 = vrot.slane %v4046_v34, %v3811_v29 }
 0x2d8   :  { %v2149_v53 = vsel %vm1648_vm1, %v2148_v43, %v2144_v36  ;;  %v2120_v17 = vsel %vm1718_vm11, %v2119_v16, %v4036_v8  ;;  %v2163_v51 = vrot.slane %v4050_v47, %v3816_v32  ;;  %v2218_v25 = vrot.slane %v4042_v45, %v3782_v63 }
 0x2d9   :  { %v4056_v5 = vpop.permute.xlu1 %1589  ;;  %v2154_v1 = vsel %vm1655_vm2, %v2153_v14, %v2149_v53  ;;  %v2304_v45 = vsel %vm2303_vm10, %v2295_v13, 0.0 }
 0x2da   :  { %v2227_v34 = vrot.slane %v4056_v5, %v3796_v12  ;;  %v2159_v3 = vsel %vm1662_vm3, %v2158_v18, %v2154_v1 }
 0x2db   :  { %v4062_v15 = vpop.permute.xlu0 %1553  ;;  %v2164_v5 = vsel %vm1669_vm4, %v2163_v51, %v2159_v3 }
 0x2dc   :  { %v2168_v8 = vrot.slane %v4062_v15, %v3827_v0 }
 0x2dd   :  { %v4072_v42 = vpop.permute.xlu1 %1592 }
 0x2de   :  { %v2232_v63 = vrot.slane %v4072_v42, %v3801_v6  ;;  %v2169_v36 = vsel %vm1676_vm5, %v2168_v8, %v2164_v5  ;;  %v4505_v8 = vld [vmem:[#allocation18_spill] sm:$0xff]  ;;  %v4506_v5 = vld [vmem:[#allocation19_spill] sm:$0xff] }
 0x2df   :  { %v4077_v20 = vpop.permute.xlu0 %1556 }
 0x2e0   :  { %v2173_v59 = vrot.slane %v4077_v20, %v3832_v56 }
 0x2e1   :  { %v4088_v30 = vpop.permute.xlu1 %1595 }
 0x2e2   :  { %v2237_v15 = vrot.slane %v4088_v30, %v3811_v29  ;;  %v2174_v43 = vsel %vm1683_vm6, %v2173_v59, %v2169_v36 }
 0x2e3   :  { %v4093_v44 = vpop.permute.xlu0 %1559 }
 0x2e4   :  { %v2178_v27 = vrot.slane %v4093_v44, %v3843_v55 }
 0x2e5   :  { %v4104_v26 = vpop.permute.xlu1 %1598 }
 0x2e6   :  { %v2242_v6 = vrot.slane %v4104_v26, %v3816_v32 }
 0x2e7   :  { %v4109_v54 = vpop.permute.xlu0 %1562 }
 0x2e8   :  { %v2183_v20 = vrot.slane %v4109_v54, %v3848_v46 }
 0x2e9   :  { %v4120_v37 = vpop.permute.xlu1 %1601 }
 0x2ea   :  { %v2247_v29 = vrot.slane %v4120_v37, %v3827_v0  ;;  %v2179_v37 = vsel %vm1690_vm7, %v2178_v27, %v2174_v43 }
 0x2eb   :  { %v4125_v7 = vpop.permute.xlu0 %1565  ;;  %v2184_v39 = vsel %vm1697_vm8, %v2183_v20, %v2179_v37 }
 0x2ec   :  { %v2188_v44 = vrot.slane %v4125_v7, %v3859_v11 }
 0x2ed   :  { %v4136_v9 = vpop.permute.xlu1 %1604 }
 0x2ee   :  { %v2252_v32 = vrot.slane %v4136_v9, %v3832_v56  ;;  %v2189_v9 = vsel %vm1704_vm9, %v2188_v44, %v2184_v39 }
 0x2ef   :  { %v1527_v21 = vpop.permute.xlu0 %1526 }
 0x2f0   :  { %v2124_v52 = vrot.slane %v1527_v21, %v3880_v60  ;;  %v2222_v21 = vrot.slane %v4048_v24, %v3785_v50  ;;  %v1819_v24 = vsel %vm1739_vm14, %v1818_v41, %v1814_v28 }
 0x2f1   :  { %v4150_v35 = vpop.permute.xlu1 %1607 }
 0x2f2   :  { %v2125_v49 = vsel %vm1725_vm12, %v2124_v52, %v2120_v17  ;;  %v2223_v23 = vsel %vm1641_vm0, %v2222_v21, %v2218_v25  ;;  %v2257_v54 = vrot.slane %v4150_v35, %v3843_v55  ;;  %vm4503_vm0 = vcmask 786112  }
 0x2f3   :  { %v4157_v57 = vpop.permute.xlu0 %1610  ;;  %v2228_v61 = vsel %vm1648_vm1, %v2227_v34, %v2223_v23  ;;  %vm4504_vm1 = vmmov %vm4503_vm0 }
 0x2f4   :  { %v2233_v14 = vsel %vm1655_vm2, %v2232_v63, %v2228_v61  ;;  %v2262_v28 = vrot.slane %v4157_v57, %v3848_v46  ;;  %v2327_v61 = vld [vmem:[#allocation2] ss:$0 sm:$0xff]  ;;  %vm2321_vm2 = vcmask 1024  }
 0x2f5   :  { %v4170_v58 = vpop.permute.xlu1 %1568  ;;  %v2238_v52 = vsel %vm1662_vm3, %v2237_v15, %v2233_v14 }
 0x2f6   :  { %v2193_v0 = vrot.slane %v4170_v58, %v3864_v2  ;;  %v2243_v33 = vsel %vm1669_vm4, %v2242_v6, %v2238_v52 }
 0x2f7   :  { %v4181_v48 = vpop.permute.xlu0 %1571  ;;  %v2248_v56 = vsel %vm1676_vm5, %v2247_v29, %v2243_v33 }
 0x2f8   :  { %v2253_v41 = vsel %vm1683_vm6, %v2252_v32, %v2248_v56  ;;  %v2198_v55 = vrot.slane %v4181_v48, %v3875_v40  ;;  %v2194_v13 = vsel %vm4503_vm0, %v2193_v0, %v2189_v9 }
 0x2f9   :  { %v1530_v38 = vpop.permute.xlu1 %1529  ;;  %v2258_v58 = vsel %vm1690_vm7, %v2257_v54, %v2253_v41 }
 0x2fa   :  { %v2129_v62 = vrot.slane %v1530_v38, %v3891_v4  ;;  %v2263_v17 = vsel %vm1697_vm8, %v2262_v28, %v2258_v58  ;;  %v2199_v1 = vsel %vm1718_vm11, %v2198_v55, %v2194_v13 }
 0x2fb   :  { %v1533_v50 = vpop.permute.xlu0 %1532 }
 0x2fc   :  { %v2130_v31 = vsel %vm1732_vm13, %v2129_v62, %v2125_v49  ;;  %v2134_v47 = vrot.slane %v1533_v50, %v3895_v19 }
 0x2fd   :  { %v1614_v12 = vpop.permute.xlu1 %1613 }
 0x2fe   :  { %v2135_v22 = vsel %vm1739_vm14, %v2134_v47, %v2130_v31  ;;  %v2267_v53 = vrot.slane %v1614_v12, %v3859_v11 }
 0x2ff   :  { %v2296_v42 = vsel %vm2294_vm15, %v2135_v22, %v1819_v24  ;;  %v1617_v16 = vpop.permute.xlu0 %1616 }
 0x300   :  { %v2305_v30 = vsel %vm2303_vm10, %v2296_v42, 0.0  ;;  %v2272_v46 = vrot.slane %v1617_v16, %v3864_v2  ;;  %v2268_v48 = vsel %vm1704_vm9, %v2267_v53, %v2263_v17 }
 0x301   :  { %v1575_v26 = vpop.permute.xlu1 %1574  ;;  %v2306_v10 = vadd.f32 %v2305_v30, %v2304_v45 }
 0x302   :  { %v2203_v18 = vrot.slane %v1575_v26, %v3880_v60  ;;  %v2273_v24 = vsel %vm4504_vm1, %v2272_v46, %v2268_v48 }
 0x303   :  { %v1620_v7 = vpop.permute.xlu0 %1619 }
 0x304   :  { %v2204_v51 = vsel %vm1725_vm12, %v2203_v18, %v2199_v1  ;;  %v2277_v62 = vrot.slane %v1620_v7, %v3875_v40 }
 0x305   :  { %v1578_v35 = vpop.permute.xlu1 %1577 }
 0x306   :  { %v2208_v21 = vrot.slane %v1578_v35, %v3891_v4  ;;  %v2278_v47 = vsel %vm1718_vm11, %v2277_v62, %v2273_v24 }
 0x307   :  { %v1623_v38 = vpop.permute.xlu0 %1622 }
 0x308   :  { %v2209_v25 = vsel %vm1732_vm13, %v2208_v21, %v2204_v51  ;;  %v2282_v34 = vrot.slane %v1623_v38, %v3880_v60 }
 0x309   :  { %v1581_v57 = vpop.permute.xlu1 %1580 }
 0x30a   :  { %v2213_v11 = vrot.slane %v1581_v57, %v3895_v19  ;;  %v2283_v23 = vsel %vm1725_vm12, %v2282_v34, %v2278_v47 }
 0x30b   :  { %v1629_v50 = vpop.permute.xlu0 %1628 }
 0x30c   :  { %v2214_v49 = vsel %vm1739_vm14, %v2213_v11, %v2209_v25  ;;  %v2292_v63 = vrot.slane %v1629_v50, %v3895_v19 }
 0x30d   :  { %v2297_v2 = vsel %vm2294_vm15, %v2214_v49, %v4505_v8  ;;  %v1626_v31 = vpop.permute.xlu1 %1625 }
 0x30e   :  { %v2287_v3 = vrot.slane %v1626_v31, %v3891_v4  ;;  %v2307_v40 = vsel %vm2303_vm10, %v2297_v2, 0.0 }
 0x30f   :  { %v2308_v60 = vadd.f32 %v2307_v40, %v2306_v10 }
 0x310   :  { %v2288_v12 = vsel %vm1732_vm13, %v2287_v3, %v2283_v23 }
 0x311   :  { %v2293_v45 = vsel %vm1739_vm14, %v2292_v63, %v2288_v12 }
 0x312   :  { %v2298_v59 = vsel %vm2294_vm15, %v2293_v45, %v4506_v5 }
 0x313   :  { %v2309_v15 = vsel %vm2303_vm10, %v2298_v59, 0.0 }
 0x314   :  { %v2310_v22 = vadd.f32 %v2309_v15, %v2308_v60 }
 0x316   :  { %2311 = vadd.xlane.f32.xlu1 %v2310_v22 }
 0x39f   :  { %v2312_v4 = vpop.xlane.xlu1 %2311 }
 0x3a0   :  { %v2320_v27 = vadd.f32 %v2327_v61, %v2312_v4 }
 0x3a2   :  { %2322 = vst.msk [vmem:[%s4288_s3] sm:$0x3] %vm2321_vm2, %v2320_v27 }

</bundles_post_ra>
